<compile_context>
chip_gen: v7x
topology: tpu7x:2x2x1
jax: 0.10.0
libtpu: 0.0.40
codegen_flags: <defaults>
</compile_context>

<pallas_src>
import functools
import math

import jax
import jax.numpy as jnp
from jax.experimental import pallas as pl
from jax.experimental.pallas import tpu as pltpu

# ----------------------------- config (mini-BERT) ---------------------------
VOCAB = 128
HIDDEN = 32
N_LAYERS = 2
N_HEADS = 2
HEAD_DIM = HIDDEN // N_HEADS
INTERMEDIATE = 64
MAX_POS = 64
TYPE_VOCAB = 2
NUM_LABELS = 2
LN_EPS = 1e-12

WCOLS = 64   # lane width of the bf16 weight slab (max weight column count)
VCOLS = 64   # lane width of the f32 vector slab (max vector length)


def _pad16(n):
    return ((n + 15) // 16) * 16


# ----------------------- slab layouts (shape-only, static) -------------------

def weight_slab_spec(seq):
    """Ordered (name, rows, cols) blocks of the bf16 weight slab."""
    spec = [("emb", _pad16(VOCAB + TYPE_VOCAB + seq), HIDDEN)]
    for l in range(N_LAYERS):
        for h in range(N_HEADS):
            spec += [(f"wq_{l}_{h}", HIDDEN, HEAD_DIM),
                     (f"wk_{l}_{h}", HIDDEN, HEAD_DIM),
                     (f"wv_{l}_{h}", HIDDEN, HEAD_DIM),
                     (f"wo_{l}_{h}", HEAD_DIM, HIDDEN)]
        spec += [(f"wi_{l}", HIDDEN, INTERMEDIATE),
                 (f"wo2_{l}", INTERMEDIATE, HIDDEN)]
    spec += [("pooler_w", HIDDEN, HIDDEN), ("cls_w", HIDDEN, NUM_LABELS)]
    return spec


def weight_layout(seq):
    layout, row = {}, 0
    for name, r, c in weight_slab_spec(seq):
        layout[name] = (row, r, c)
        row += _pad16(r)            # keep every block 16-row (bf16 tile) aligned
    return layout, row


def vector_slab_spec():
    spec = [("emb_ln_g", HIDDEN), ("emb_ln_b", HIDDEN)]
    for l in range(N_LAYERS):
        for h in range(N_HEADS):
            spec += [(f"bq_{l}_{h}", HEAD_DIM), (f"bk_{l}_{h}", HEAD_DIM),
                     (f"bv_{l}_{h}", HEAD_DIM)]
        spec += [(f"bo_{l}", HIDDEN), (f"ln1_g_{l}", HIDDEN), (f"ln1_b_{l}", HIDDEN),
                 (f"bi_{l}", INTERMEDIATE), (f"bo2_{l}", HIDDEN),
                 (f"ln2_g_{l}", HIDDEN), (f"ln2_b_{l}", HIDDEN)]
    spec += [("pooler_b", HIDDEN), ("cls_b", NUM_LABELS)]
    return spec


def vector_layout():
    spec = vector_slab_spec()
    return {name: (i, n) for i, (name, n) in enumerate(spec)}, len(spec)


# ----------------------------- parameter packing ----------------------------

def _named_weight_arrays(params, seq):
    emb = jnp.concatenate(
        [params["word_emb"], params["type_emb"], params["pos_emb"][:seq]], axis=0)
    emb = jnp.pad(emb, ((0, _pad16(emb.shape[0]) - emb.shape[0]), (0, 0)))
    d = {"emb": emb}
    for l in range(N_LAYERS):
        for h in range(N_HEADS):
            c0, c1 = h * HEAD_DIM, (h + 1) * HEAD_DIM
            d[f"wq_{l}_{h}"] = params["wq"][l][:, c0:c1]
            d[f"wk_{l}_{h}"] = params["wk"][l][:, c0:c1]
            d[f"wv_{l}_{h}"] = params["wv"][l][:, c0:c1]
            d[f"wo_{l}_{h}"] = params["wo"][l][c0:c1, :]
        d[f"wi_{l}"] = params["wi"][l]
        d[f"wo2_{l}"] = params["wo2"][l]
    d["pooler_w"] = params["pooler_w"]
    d["cls_w"] = params["cls_w"]
    return d


def _named_vector_arrays(params):
    d = {"emb_ln_g": params["emb_ln_g"], "emb_ln_b": params["emb_ln_b"]}
    for l in range(N_LAYERS):
        for h in range(N_HEADS):
            c0, c1 = h * HEAD_DIM, (h + 1) * HEAD_DIM
            d[f"bq_{l}_{h}"] = params["bq"][l][c0:c1]
            d[f"bk_{l}_{h}"] = params["bk"][l][c0:c1]
            d[f"bv_{l}_{h}"] = params["bv"][l][c0:c1]
        d[f"bo_{l}"] = params["bo"][l]
        d[f"ln1_g_{l}"] = params["ln1_g"][l]
        d[f"ln1_b_{l}"] = params["ln1_b"][l]
        d[f"bi_{l}"] = params["bi"][l]
        d[f"bo2_{l}"] = params["bo2"][l]
        d[f"ln2_g_{l}"] = params["ln2_g"][l]
        d[f"ln2_b_{l}"] = params["ln2_b"][l]
    d["pooler_b"] = params["pooler_b"]
    d["cls_b"] = params["cls_b"]
    return d


def pack_params(params, seq):
    """One-time host-side packing: all weights -> one bf16 slab, all
    bias/LayerNorm vectors -> one f32 slab (two DMAs at kernel launch)."""
    wl, wrows = weight_layout(seq)
    wn = _named_weight_arrays(params, seq)
    wslab = jnp.zeros((wrows, WCOLS), jnp.float32)
    for name, (row, r, c) in wl.items():
        wslab = wslab.at[row:row + r, :c].set(wn[name])
    wslab = wslab.astype(jnp.bfloat16)

    vl, vrows = vector_layout()
    vn = _named_vector_arrays(params)
    vslab = jnp.zeros((vrows, VCOLS), jnp.float32)
    for name, (row, n) in vl.items():
        vslab = vslab.at[row, :n].set(vn[name].reshape(-1))
    return wslab, vslab


# ----------------------------- fused Pallas kernel ---------------------------

def _bert_fwd_kernel(mh_ref, bias_ref, onehot_ref, w_ref, v_ref, loss_ref,
                     *, batch, seq, wl, vl):
    f32, bf16 = jnp.float32, jnp.bfloat16
    n_tok = batch * seq
    scale = 1.0 / math.sqrt(HEAD_DIM)

    def W(name):                                    # bf16 weight block
        row, r, c = wl[name]
        return w_ref[row:row + r, 0:c]

    def V(name):                                    # f32 [1, n] bias/LN vector
        row, n = vl[name]
        return v_ref[row:row + 1, 0:n]

    def mm(a, b):                                   # bf16 operands, f32 accumulate
        return jnp.dot(a.astype(bf16), b.astype(bf16),
                       preferred_element_type=f32)

    def layer_norm(t, g, beta):                     # all-f32 elementwise
        mu = jnp.mean(t, axis=-1, keepdims=True)
        var = jnp.mean(jnp.square(t - mu), axis=-1, keepdims=True)
        return (t - mu) * jax.lax.rsqrt(var + LN_EPS) * g + beta

    # ---- embeddings: multi-hot @ table (word + type + position in one go) --
    x = mm(mh_ref[...], W("emb"))                                   # [B*S, H]
    x = layer_norm(x, V("emb_ln_g"), V("emb_ln_b"))
    # TODO(synk): dropout omitted (deterministic / eval semantics).

    bias = bias_ref[...]                                            # [B*S, B*S]

    # ---- encoder layers (statically unrolled) ------------------------------
    for l in range(N_LAYERS):
        xb = x.astype(bf16)
        attn = jnp.zeros((n_tok, HIDDEN), f32)
        for h in range(N_HEADS):
            qh = mm(xb, W(f"wq_{l}_{h}")) + V(f"bq_{l}_{h}")        # [B*S, dh]
            kh = mm(xb, W(f"wk_{l}_{h}")) + V(f"bk_{l}_{h}")
            vh = mm(xb, W(f"wv_{l}_{h}")) + V(f"bv_{l}_{h}")
            s = jax.lax.dot_general(
                qh.astype(bf16), kh.astype(bf16),
                (((1,), (1,)), ((), ())),
                preferred_element_type=f32) * scale + bias          # [B*S, B*S]
            m = jnp.max(s, axis=-1, keepdims=True)
            p = jnp.exp(s - m)
            p = p * pl.reciprocal(jnp.sum(p, axis=-1, keepdims=True), approx=True)
            # head combine == concat(heads) @ Wo, via row-sliced Wo blocks
            attn = attn + mm(mm(p, vh), W(f"wo_{l}_{h}"))           # [B*S, H]
        attn = attn + V(f"bo_{l}")
        x = layer_norm(x + attn, V(f"ln1_g_{l}"), V(f"ln1_b_{l}"))

        h1 = mm(x, W(f"wi_{l}")) + V(f"bi_{l}")                     # [B*S, I]
        # TODO(synk): HF BERT uses exact erf-GELU; tanh approximation here
        # (matched by the in-file reference).
        h1 = jax.nn.gelu(h1, approximate=True)
        h2 = mm(h1, W(f"wo2_{l}")) + V(f"bo2_{l}")                  # [B*S, H]
        x = layer_norm(x + h2, V(f"ln2_g_{l}"), V(f"ln2_b_{l}"))

    # ---- pooler (CLS token via constant selection matmul) + classifier -----
    col = jax.lax.broadcasted_iota(jnp.int32, (batch, n_tok), 1)
    row_i = jax.lax.broadcasted_iota(jnp.int32, (batch, n_tok), 0)
    sel = jnp.where(col == row_i * seq, 1.0, 0.0).astype(bf16)      # [B, B*S]
    cls = jnp.dot(sel, x.astype(bf16), preferred_element_type=f32)  # [B, H]

    pooled = jnp.tanh(mm(cls, W("pooler_w")) + V("pooler_b"))       # [B, H]
    logits = mm(pooled, W("cls_w")) + V("cls_b")                    # [B, C]

    # ---- mean cross-entropy loss -------------------------------------------
    m = jnp.max(logits, axis=-1, keepdims=True)
    lse = jnp.log(jnp.sum(jnp.exp(logits - m), axis=-1, keepdims=True)) + m
    nll = lse - jnp.sum(logits * onehot_ref[...], axis=-1, keepdims=True)
    loss_ref[...] = jnp.mean(nll, keepdims=True)                    # [1, 1]


# ----------------------------- forward wrapper -------------------------------

def forward(wslab, vslab, input_ids, attention_mask, token_type_ids, labels):
    B, S = input_ids.shape
    wl, _ = weight_layout(S)
    vl, _ = vector_layout()
    emb_cols = wl["emb"][1]                      # padded multi-hot width
    emb_rows = VOCAB + TYPE_VOCAB + S

    # Multi-hot rows select word + type + position embedding rows in one matmul.
    ids = input_ids.reshape(-1)
    types = token_type_ids.reshape(-1)
    pos = jnp.broadcast_to(jnp.arange(S, dtype=jnp.int32), (B, S)).reshape(-1)
    multi_hot = jnp.concatenate(
        [jax.nn.one_hot(ids, VOCAB, dtype=jnp.float32),
         jax.nn.one_hot(types, TYPE_VOCAB, dtype=jnp.float32),
         jax.nn.one_hot(pos, S, dtype=jnp.float32)], axis=1)
    multi_hot = jnp.pad(
        multi_hot, ((0, 0), (0, emb_cols - emb_rows))).astype(jnp.bfloat16)

    # Block-diagonal additive attention bias: cross-example and padded keys get
    # -1e4 (probability underflows to exactly 0, matching per-example masking).
    key_valid = attention_mask.astype(jnp.float32).reshape(1, B * S)
    same_example = jnp.kron(jnp.eye(B, dtype=jnp.float32),
                            jnp.ones((S, S), jnp.float32))
    attn_bias = (1.0 - same_example * key_valid) * -10000.0         # [B*S, B*S]

    onehot = jax.nn.one_hot(labels, NUM_LABELS, dtype=jnp.float32)  # [B, C]

    vmem = pl.BlockSpec(memory_space=pltpu.MemorySpace.VMEM)
    loss = pl.pallas_call(
        functools.partial(_bert_fwd_kernel, batch=B, seq=S, wl=wl, vl=vl),
        out_shape=jax.ShapeDtypeStruct((1, 1), jnp.float32),
        in_specs=[vmem] * 5,
        out_specs=vmem,
    )(multi_hot, attn_bias, onehot, wslab, vslab)
    return {"loss": loss[0, 0]}


# ----------------------------- parameters -----------------------------------

def init_params(key):
    def normal(k, shape, scale=0.02):
        return scale * jax.random.normal(k, shape, dtype=jnp.float32)

    keys = jax.random.split(key, 8 + N_LAYERS)
    p = {
        "word_emb": normal(keys[0], (VOCAB, HIDDEN)),
        "pos_emb": normal(keys[1], (MAX_POS, HIDDEN)),
        "type_emb": normal(keys[2], (TYPE_VOCAB, HIDDEN)),
        "emb_ln_g": 1.0 + normal(keys[3], (HIDDEN,), 0.05),
        "emb_ln_b": normal(keys[4], (HIDDEN,)),
        "pooler_w": normal(keys[5], (HIDDEN, HIDDEN)),
        "pooler_b": normal(keys[6], (HIDDEN,)),
        "cls_w": normal(keys[7], (HIDDEN, NUM_LABELS), 0.1),
        "cls_b": jnp.zeros((NUM_LABELS,), jnp.float32),
    }
    per = {k: [] for k in ("wq", "wk", "wv", "bq", "bk", "bv", "wo", "bo",
                           "ln1_g", "ln1_b", "wi", "bi", "wo2", "bo2",
                           "ln2_g", "ln2_b")}
    for l in range(N_LAYERS):
        lk = jax.random.split(keys[8 + l], 16)
        per["wq"].append(normal(lk[0], (HIDDEN, HIDDEN)))
        per["wk"].append(normal(lk[1], (HIDDEN, HIDDEN)))
        per["wv"].append(normal(lk[2], (HIDDEN, HIDDEN)))
        per["bq"].append(normal(lk[3], (HIDDEN,)))
        per["bk"].append(normal(lk[4], (HIDDEN,)))
        per["bv"].append(normal(lk[5], (HIDDEN,)))
        per["wo"].append(normal(lk[6], (HIDDEN, HIDDEN)))
        per["bo"].append(normal(lk[7], (HIDDEN,)))
        per["ln1_g"].append(1.0 + normal(lk[8], (HIDDEN,), 0.05))
        per["ln1_b"].append(normal(lk[9], (HIDDEN,)))
        per["wi"].append(normal(lk[10], (HIDDEN, INTERMEDIATE)))
        per["bi"].append(normal(lk[11], (INTERMEDIATE,)))
        per["wo2"].append(normal(lk[12], (INTERMEDIATE, HIDDEN)))
        per["bo2"].append(normal(lk[13], (HIDDEN,)))
        per["ln2_g"].append(1.0 + normal(lk[14], (HIDDEN,), 0.05))
        per["ln2_b"].append(normal(lk[15], (HIDDEN,)))
    p.update({k: jnp.stack(v) for k, v in per.items()})
    return p


# ----------------------------- pure-JAX reference -----------------------------

def reference_forward(params, input_ids, attention_mask, token_type_ids, labels):
    B, S = input_ids.shape

    def layer_norm(t, g, beta):
        mu = jnp.mean(t, axis=-1, keepdims=True)
        var = jnp.mean(jnp.square(t - mu), axis=-1, keepdims=True)
        return (t - mu) * jax.lax.rsqrt(var + LN_EPS) * g + beta

    we = jnp.take(params["word_emb"], input_ids, axis=0)
    pe = params["pos_emb"][:S][None, :, :]
    te = jnp.take(params["type_emb"], token_type_ids, axis=0)
    x = (we + pe + te).reshape(B * S, HIDDEN)
    x = layer_norm(x, params["emb_ln_g"], params["emb_ln_b"])
    mask_add = (1.0 - attention_mask.astype(jnp.float32)) * -10000.0

    for l in range(N_LAYERS):
        q = x @ params["wq"][l] + params["bq"][l]
        k = x @ params["wk"][l] + params["bk"][l]
        v = x @ params["wv"][l] + params["bv"][l]

        def split(t):
            return t.reshape(B, S, N_HEADS, HEAD_DIM).transpose(0, 2, 1, 3)

        qh, kh, vh = split(q), split(k), split(v)
        s = jnp.einsum("bhqd,bhkd->bhqk", qh, kh) / math.sqrt(HEAD_DIM)
        s = s + mask_add[:, None, None, :]
        p = jax.nn.softmax(s, axis=-1)
        ctx = jnp.einsum("bhqk,bhkd->bhqd", p, vh)
        ctx = ctx.transpose(0, 2, 1, 3).reshape(B * S, HIDDEN)
        x = layer_norm(x + ctx @ params["wo"][l] + params["bo"][l],
                       params["ln1_g"][l], params["ln1_b"][l])
        h1 = jax.nn.gelu(x @ params["wi"][l] + params["bi"][l], approximate=True)
        x = layer_norm(x + h1 @ params["wo2"][l] + params["bo2"][l],
                       params["ln2_g"][l], params["ln2_b"][l])

    cls = x.reshape(B, S, HIDDEN)[:, 0, :]
    pooled = jnp.tanh(cls @ params["pooler_w"] + params["pooler_b"])
    logits = pooled @ params["cls_w"] + params["cls_b"]
    onehot = jax.nn.one_hot(labels, NUM_LABELS, dtype=jnp.float32)
    m = jnp.max(logits, axis=-1, keepdims=True)
    lse = jnp.log(jnp.sum(jnp.exp(logits - m), axis=-1, keepdims=True)) + m
    nll = lse - jnp.sum(logits * onehot, axis=-1, keepdims=True)
    return jnp.mean(nll)


# ----------------------------- main ------------------------------------------

if __name__ == "__main__":
    key = jax.random.PRNGKey(0)
    pkey, ikey, lkey = jax.random.split(key, 3)
    params = init_params(pkey)

    B, S = 2, 8
    input_ids = jax.random.randint(ikey, (B, S), 0, VOCAB, dtype=jnp.int32)
    attention_mask = jnp.array([[1] * S, [1] * 6 + [0] * 2], dtype=jnp.int32)
    token_type_ids = jnp.concatenate(
        [jnp.zeros((B, S // 2), jnp.int32), jnp.ones((B, S // 2), jnp.int32)], axis=1)
    labels = jax.random.randint(lkey, (B,), 0, NUM_LABELS, dtype=jnp.int32)

    # One-time host-side packing of all parameters into two DMA slabs.
    wslab, vslab = pack_params(params, S)

    out = jax.jit(forward)(wslab, vslab, input_ids, attention_mask,
                           token_type_ids, labels)
    jax.block_until_ready(out["loss"])

    loss_ref = reference_forward(params, input_ids, attention_mask,
                                 token_type_ids, labels)

    assert out["loss"].shape == () and bool(jnp.isfinite(out["loss"]))
    assert bool(jnp.abs(out["loss"] - loss_ref) < 1e-2), (
        f"kernel loss {out['loss']} vs reference {loss_ref}")
    print("KERNEL_OK")
</pallas_src>

<mosaic_0001>
module attributes {stable_mosaic.version = 11 : i64} {
  func.func @_bert_fwd_kernel(%arg0: memref<16x144xbf16, #tpu.memory_space<vmem>>, %arg1: memref<16x16xf32, #tpu.memory_space<vmem>>, %arg2: memref<2x2xf32, #tpu.memory_space<vmem>>, %arg3: memref<848x64xbf16, #tpu.memory_space<vmem>>, %arg4: memref<30x64xf32, #tpu.memory_space<vmem>>, %arg5: memref<1x1xf32, #tpu.memory_space<vmem>>) attributes {dimension_semantics = [], scalar_prefetch = 0 : i64, scratch_operands = 0 : i64, tpu.core_type = #tpu.core_type<tc>} {
    %c0 = arith.constant 0 : index
    %c0_0 = arith.constant 0 : index
    %0 = vector.load %arg0[%c0, %c0_0] : memref<16x144xbf16, #tpu.memory_space<vmem>>, vector<16x144xbf16>
    %c0_1 = arith.constant 0 : index
    %c0_2 = arith.constant 0 : index
    %1 = vector.load %arg3[%c0_1, %c0_2] : memref<848x64xbf16, #tpu.memory_space<vmem>>, vector<144x32xbf16>
    %cst = arith.constant dense<0.000000e+00> : vector<16x32xf32>
    %2 = tpu.matmul %0, %1, %cst {dimension_numbers = #tpu.dot_dimension_numbers<[1], [0], [0], [1], [0, 0, 1, 1], [], []>} : vector<16x144xbf16>, vector<144x32xbf16>, vector<16x32xf32> -> vector<16x32xf32>
    %c0_3 = arith.constant 0 : index
    %c0_4 = arith.constant 0 : index
    %3 = vector.load %arg4[%c0_3, %c0_4] : memref<30x64xf32, #tpu.memory_space<vmem>>, vector<1x32xf32>
    %c1 = arith.constant 1 : index
    %c0_5 = arith.constant 0 : index
    %4 = vector.load %arg4[%c1, %c0_5] : memref<30x64xf32, #tpu.memory_space<vmem>>, vector<1x32xf32>
    %cst_6 = arith.constant dense<0.000000e+00> : vector<16xf32>
    %5 = vector.multi_reduction <add>, %2, %cst_6 [1] : vector<16x32xf32> to vector<16xf32>
    %6 = vector.shape_cast %5 : vector<16xf32> to vector<16x1xf32>
    %cst_7 = arith.constant 3.200000e+01 : f32
    %7 = vector.broadcast %cst_7 : f32 to vector<16x1xf32>
    %8 = arith.divf %6, %7 : vector<16x1xf32>
    %9 = vector.broadcast %8 : vector<16x1xf32> to vector<16x32xf32>
    %10 = arith.subf %2, %9 : vector<16x32xf32>
    %11 = arith.mulf %10, %10 : vector<16x32xf32>
    %cst_8 = arith.constant dense<0.000000e+00> : vector<16xf32>
    %12 = vector.multi_reduction <add>, %11, %cst_8 [1] : vector<16x32xf32> to vector<16xf32>
    %13 = vector.shape_cast %12 : vector<16xf32> to vector<16x1xf32>
    %cst_9 = arith.constant 3.200000e+01 : f32
    %14 = vector.broadcast %cst_9 : f32 to vector<16x1xf32>
    %15 = arith.divf %13, %14 : vector<16x1xf32>
    %16 = vector.broadcast %8 : vector<16x1xf32> to vector<16x32xf32>
    %17 = arith.subf %2, %16 : vector<16x32xf32>
    %cst_10 = arith.constant 9.99999996E-13 : f32
    %18 = vector.broadcast %cst_10 : f32 to vector<16x1xf32>
    %19 = arith.addf %15, %18 : vector<16x1xf32>
    %20 = math.rsqrt %19 : vector<16x1xf32>
    %21 = vector.broadcast %20 : vector<16x1xf32> to vector<16x32xf32>
    %22 = arith.mulf %17, %21 : vector<16x32xf32>
    %23 = vector.broadcast %3 : vector<1x32xf32> to vector<16x32xf32>
    %24 = arith.mulf %22, %23 : vector<16x32xf32>
    %25 = vector.broadcast %4 : vector<1x32xf32> to vector<16x32xf32>
    %26 = arith.addf %24, %25 : vector<16x32xf32>
    %c0_11 = arith.constant 0 : index
    %c0_12 = arith.constant 0 : index
    %27 = vector.load %arg1[%c0_11, %c0_12] : memref<16x16xf32, #tpu.memory_space<vmem>>, vector<16x16xf32>
    %28 = arith.truncf %26 : vector<16x32xf32> to vector<16x32xbf16>
    %cst_13 = arith.constant 0.000000e+00 : f32
    %29 = vector.broadcast %cst_13 : f32 to vector<16x32xf32>
    %c144 = arith.constant 144 : index
    %c0_14 = arith.constant 0 : index
    %30 = vector.load %arg3[%c144, %c0_14] : memref<848x64xbf16, #tpu.memory_space<vmem>>, vector<32x16xbf16>
    %cst_15 = arith.constant dense<0.000000e+00> : vector<16x16xf32>
    %31 = tpu.matmul %28, %30, %cst_15 {dimension_numbers = #tpu.dot_dimension_numbers<[1], [0], [0], [1], [0, 0, 1, 1], [], []>} : vector<16x32xbf16>, vector<32x16xbf16>, vector<16x16xf32> -> vector<16x16xf32>
    %c2 = arith.constant 2 : index
    %c0_16 = arith.constant 0 : index
    %32 = vector.load %arg4[%c2, %c0_16] : memref<30x64xf32, #tpu.memory_space<vmem>>, vector<1x16xf32>
    %33 = vector.broadcast %32 : vector<1x16xf32> to vector<16x16xf32>
    %34 = arith.addf %31, %33 : vector<16x16xf32>
    %c176 = arith.constant 176 : index
    %c0_17 = arith.constant 0 : index
    %35 = vector.load %arg3[%c176, %c0_17] : memref<848x64xbf16, #tpu.memory_space<vmem>>, vector<32x16xbf16>
    %cst_18 = arith.constant dense<0.000000e+00> : vector<16x16xf32>
    %36 = tpu.matmul %28, %35, %cst_18 {dimension_numbers = #tpu.dot_dimension_numbers<[1], [0], [0], [1], [0, 0, 1, 1], [], []>} : vector<16x32xbf16>, vector<32x16xbf16>, vector<16x16xf32> -> vector<16x16xf32>
    %c3 = arith.constant 3 : index
    %c0_19 = arith.constant 0 : index
    %37 = vector.load %arg4[%c3, %c0_19] : memref<30x64xf32, #tpu.memory_space<vmem>>, vector<1x16xf32>
    %38 = vector.broadcast %37 : vector<1x16xf32> to vector<16x16xf32>
    %39 = arith.addf %36, %38 : vector<16x16xf32>
    %c208 = arith.constant 208 : index
    %c0_20 = arith.constant 0 : index
    %40 = vector.load %arg3[%c208, %c0_20] : memref<848x64xbf16, #tpu.memory_space<vmem>>, vector<32x16xbf16>
    %cst_21 = arith.constant dense<0.000000e+00> : vector<16x16xf32>
    %41 = tpu.matmul %28, %40, %cst_21 {dimension_numbers = #tpu.dot_dimension_numbers<[1], [0], [0], [1], [0, 0, 1, 1], [], []>} : vector<16x32xbf16>, vector<32x16xbf16>, vector<16x16xf32> -> vector<16x16xf32>
    %c4 = arith.constant 4 : index
    %c0_22 = arith.constant 0 : index
    %42 = vector.load %arg4[%c4, %c0_22] : memref<30x64xf32, #tpu.memory_space<vmem>>, vector<1x16xf32>
    %43 = vector.broadcast %42 : vector<1x16xf32> to vector<16x16xf32>
    %44 = arith.addf %41, %43 : vector<16x16xf32>
    %45 = arith.truncf %34 : vector<16x16xf32> to vector<16x16xbf16>
    %46 = arith.truncf %39 : vector<16x16xf32> to vector<16x16xbf16>
    %cst_23 = arith.constant dense<0.000000e+00> : vector<16x16xf32>
    %47 = tpu.matmul %45, %46, %cst_23 {dimension_numbers = #tpu.dot_dimension_numbers<[1], [1], [0], [0], [0, 0, 1, 0], [], []>} : vector<16x16xbf16>, vector<16x16xbf16>, vector<16x16xf32> -> vector<16x16xf32>
    %cst_24 = arith.constant 2.500000e-01 : f32
    %48 = vector.broadcast %cst_24 : f32 to vector<16x16xf32>
    %49 = arith.mulf %47, %48 : vector<16x16xf32>
    %50 = arith.addf %49, %27 : vector<16x16xf32>
    %cst_25 = arith.constant dense<0xFF800000> : vector<16xf32>
    %51 = vector.multi_reduction <maximumf>, %50, %cst_25 [1] : vector<16x16xf32> to vector<16xf32>
    %52 = vector.shape_cast %51 : vector<16xf32> to vector<16x1xf32>
    %53 = vector.broadcast %52 : vector<16x1xf32> to vector<16x16xf32>
    %54 = arith.subf %50, %53 : vector<16x16xf32>
    %55 = math.exp %54 : vector<16x16xf32>
    %cst_26 = arith.constant dense<0.000000e+00> : vector<16xf32>
    %56 = vector.multi_reduction <add>, %55, %cst_26 [1] : vector<16x16xf32> to vector<16xf32>
    %57 = vector.shape_cast %56 : vector<16xf32> to vector<16x1xf32>
    %58 = tpu.reciprocal %57 {approx = true} : vector<16x1xf32> -> vector<16x1xf32>
    %59 = vector.broadcast %58 : vector<16x1xf32> to vector<16x16xf32>
    %60 = arith.mulf %55, %59 : vector<16x16xf32>
    %61 = arith.truncf %60 : vector<16x16xf32> to vector<16x16xbf16>
    %62 = arith.truncf %44 : vector<16x16xf32> to vector<16x16xbf16>
    %cst_27 = arith.constant dense<0.000000e+00> : vector<16x16xf32>
    %63 = tpu.matmul %61, %62, %cst_27 {dimension_numbers = #tpu.dot_dimension_numbers<[1], [0], [0], [1], [0, 0, 1, 1], [], []>} : vector<16x16xbf16>, vector<16x16xbf16>, vector<16x16xf32> -> vector<16x16xf32>
    %c240 = arith.constant 240 : index
    %c0_28 = arith.constant 0 : index
    %64 = vector.load %arg3[%c240, %c0_28] : memref<848x64xbf16, #tpu.memory_space<vmem>>, vector<16x32xbf16>
    %65 = arith.truncf %63 : vector<16x16xf32> to vector<16x16xbf16>
    %cst_29 = arith.constant dense<0.000000e+00> : vector<16x32xf32>
    %66 = tpu.matmul %65, %64, %cst_29 {dimension_numbers = #tpu.dot_dimension_numbers<[1], [0], [0], [1], [0, 0, 1, 1], [], []>} : vector<16x16xbf16>, vector<16x32xbf16>, vector<16x32xf32> -> vector<16x32xf32>
    %67 = arith.addf %29, %66 : vector<16x32xf32>
    %c256 = arith.constant 256 : index
    %c0_30 = arith.constant 0 : index
    %68 = vector.load %arg3[%c256, %c0_30] : memref<848x64xbf16, #tpu.memory_space<vmem>>, vector<32x16xbf16>
    %cst_31 = arith.constant dense<0.000000e+00> : vector<16x16xf32>
    %69 = tpu.matmul %28, %68, %cst_31 {dimension_numbers = #tpu.dot_dimension_numbers<[1], [0], [0], [1], [0, 0, 1, 1], [], []>} : vector<16x32xbf16>, vector<32x16xbf16>, vector<16x16xf32> -> vector<16x16xf32>
    %c5 = arith.constant 5 : index
    %c0_32 = arith.constant 0 : index
    %70 = vector.load %arg4[%c5, %c0_32] : memref<30x64xf32, #tpu.memory_space<vmem>>, vector<1x16xf32>
    %71 = vector.broadcast %70 : vector<1x16xf32> to vector<16x16xf32>
    %72 = arith.addf %69, %71 : vector<16x16xf32>
    %c288 = arith.constant 288 : index
    %c0_33 = arith.constant 0 : index
    %73 = vector.load %arg3[%c288, %c0_33] : memref<848x64xbf16, #tpu.memory_space<vmem>>, vector<32x16xbf16>
    %cst_34 = arith.constant dense<0.000000e+00> : vector<16x16xf32>
    %74 = tpu.matmul %28, %73, %cst_34 {dimension_numbers = #tpu.dot_dimension_numbers<[1], [0], [0], [1], [0, 0, 1, 1], [], []>} : vector<16x32xbf16>, vector<32x16xbf16>, vector<16x16xf32> -> vector<16x16xf32>
    %c6 = arith.constant 6 : index
    %c0_35 = arith.constant 0 : index
    %75 = vector.load %arg4[%c6, %c0_35] : memref<30x64xf32, #tpu.memory_space<vmem>>, vector<1x16xf32>
    %76 = vector.broadcast %75 : vector<1x16xf32> to vector<16x16xf32>
    %77 = arith.addf %74, %76 : vector<16x16xf32>
    %c320 = arith.constant 320 : index
    %c0_36 = arith.constant 0 : index
    %78 = vector.load %arg3[%c320, %c0_36] : memref<848x64xbf16, #tpu.memory_space<vmem>>, vector<32x16xbf16>
    %cst_37 = arith.constant dense<0.000000e+00> : vector<16x16xf32>
    %79 = tpu.matmul %28, %78, %cst_37 {dimension_numbers = #tpu.dot_dimension_numbers<[1], [0], [0], [1], [0, 0, 1, 1], [], []>} : vector<16x32xbf16>, vector<32x16xbf16>, vector<16x16xf32> -> vector<16x16xf32>
    %c7 = arith.constant 7 : index
    %c0_38 = arith.constant 0 : index
    %80 = vector.load %arg4[%c7, %c0_38] : memref<30x64xf32, #tpu.memory_space<vmem>>, vector<1x16xf32>
    %81 = vector.broadcast %80 : vector<1x16xf32> to vector<16x16xf32>
    %82 = arith.addf %79, %81 : vector<16x16xf32>
    %83 = arith.truncf %72 : vector<16x16xf32> to vector<16x16xbf16>
    %84 = arith.truncf %77 : vector<16x16xf32> to vector<16x16xbf16>
    %cst_39 = arith.constant dense<0.000000e+00> : vector<16x16xf32>
    %85 = tpu.matmul %83, %84, %cst_39 {dimension_numbers = #tpu.dot_dimension_numbers<[1], [1], [0], [0], [0, 0, 1, 0], [], []>} : vector<16x16xbf16>, vector<16x16xbf16>, vector<16x16xf32> -> vector<16x16xf32>
    %cst_40 = arith.constant 2.500000e-01 : f32
    %86 = vector.broadcast %cst_40 : f32 to vector<16x16xf32>
    %87 = arith.mulf %85, %86 : vector<16x16xf32>
    %88 = arith.addf %87, %27 : vector<16x16xf32>
    %cst_41 = arith.constant dense<0xFF800000> : vector<16xf32>
    %89 = vector.multi_reduction <maximumf>, %88, %cst_41 [1] : vector<16x16xf32> to vector<16xf32>
    %90 = vector.shape_cast %89 : vector<16xf32> to vector<16x1xf32>
    %91 = vector.broadcast %90 : vector<16x1xf32> to vector<16x16xf32>
    %92 = arith.subf %88, %91 : vector<16x16xf32>
    %93 = math.exp %92 : vector<16x16xf32>
    %cst_42 = arith.constant dense<0.000000e+00> : vector<16xf32>
    %94 = vector.multi_reduction <add>, %93, %cst_42 [1] : vector<16x16xf32> to vector<16xf32>
    %95 = vector.shape_cast %94 : vector<16xf32> to vector<16x1xf32>
    %96 = tpu.reciprocal %95 {approx = true} : vector<16x1xf32> -> vector<16x1xf32>
    %97 = vector.broadcast %96 : vector<16x1xf32> to vector<16x16xf32>
    %98 = arith.mulf %93, %97 : vector<16x16xf32>
    %99 = arith.truncf %98 : vector<16x16xf32> to vector<16x16xbf16>
    %100 = arith.truncf %82 : vector<16x16xf32> to vector<16x16xbf16>
    %cst_43 = arith.constant dense<0.000000e+00> : vector<16x16xf32>
    %101 = tpu.matmul %99, %100, %cst_43 {dimension_numbers = #tpu.dot_dimension_numbers<[1], [0], [0], [1], [0, 0, 1, 1], [], []>} : vector<16x16xbf16>, vector<16x16xbf16>, vector<16x16xf32> -> vector<16x16xf32>
    %c352 = arith.constant 352 : index
    %c0_44 = arith.constant 0 : index
    %102 = vector.load %arg3[%c352, %c0_44] : memref<848x64xbf16, #tpu.memory_space<vmem>>, vector<16x32xbf16>
    %103 = arith.truncf %101 : vector<16x16xf32> to vector<16x16xbf16>
    %cst_45 = arith.constant dense<0.000000e+00> : vector<16x32xf32>
    %104 = tpu.matmul %103, %102, %cst_45 {dimension_numbers = #tpu.dot_dimension_numbers<[1], [0], [0], [1], [0, 0, 1, 1], [], []>} : vector<16x16xbf16>, vector<16x32xbf16>, vector<16x32xf32> -> vector<16x32xf32>
    %105 = arith.addf %67, %104 : vector<16x32xf32>
    %c8 = arith.constant 8 : index
    %c0_46 = arith.constant 0 : index
    %106 = vector.load %arg4[%c8, %c0_46] : memref<30x64xf32, #tpu.memory_space<vmem>>, vector<1x32xf32>
    %107 = vector.broadcast %106 : vector<1x32xf32> to vector<16x32xf32>
    %108 = arith.addf %105, %107 : vector<16x32xf32>
    %109 = arith.addf %26, %108 : vector<16x32xf32>
    %c9 = arith.constant 9 : index
    %c0_47 = arith.constant 0 : index
    %110 = vector.load %arg4[%c9, %c0_47] : memref<30x64xf32, #tpu.memory_space<vmem>>, vector<1x32xf32>
    %c10 = arith.constant 10 : index
    %c0_48 = arith.constant 0 : index
    %111 = vector.load %arg4[%c10, %c0_48] : memref<30x64xf32, #tpu.memory_space<vmem>>, vector<1x32xf32>
    %cst_49 = arith.constant dense<0.000000e+00> : vector<16xf32>
    %112 = vector.multi_reduction <add>, %109, %cst_49 [1] : vector<16x32xf32> to vector<16xf32>
    %113 = vector.shape_cast %112 : vector<16xf32> to vector<16x1xf32>
    %cst_50 = arith.constant 3.200000e+01 : f32
    %114 = vector.broadcast %cst_50 : f32 to vector<16x1xf32>
    %115 = arith.divf %113, %114 : vector<16x1xf32>
    %116 = vector.broadcast %115 : vector<16x1xf32> to vector<16x32xf32>
    %117 = arith.subf %109, %116 : vector<16x32xf32>
    %118 = arith.mulf %117, %117 : vector<16x32xf32>
    %cst_51 = arith.constant dense<0.000000e+00> : vector<16xf32>
    %119 = vector.multi_reduction <add>, %118, %cst_51 [1] : vector<16x32xf32> to vector<16xf32>
    %120 = vector.shape_cast %119 : vector<16xf32> to vector<16x1xf32>
    %cst_52 = arith.constant 3.200000e+01 : f32
    %121 = vector.broadcast %cst_52 : f32 to vector<16x1xf32>
    %122 = arith.divf %120, %121 : vector<16x1xf32>
    %123 = vector.broadcast %115 : vector<16x1xf32> to vector<16x32xf32>
    %124 = arith.subf %109, %123 : vector<16x32xf32>
    %cst_53 = arith.constant 9.99999996E-13 : f32
    %125 = vector.broadcast %cst_53 : f32 to vector<16x1xf32>
    %126 = arith.addf %122, %125 : vector<16x1xf32>
    %127 = math.rsqrt %126 : vector<16x1xf32>
    %128 = vector.broadcast %127 : vector<16x1xf32> to vector<16x32xf32>
    %129 = arith.mulf %124, %128 : vector<16x32xf32>
    %130 = vector.broadcast %110 : vector<1x32xf32> to vector<16x32xf32>
    %131 = arith.mulf %129, %130 : vector<16x32xf32>
    %132 = vector.broadcast %111 : vector<1x32xf32> to vector<16x32xf32>
    %133 = arith.addf %131, %132 : vector<16x32xf32>
    %c368 = arith.constant 368 : index
    %c0_54 = arith.constant 0 : index
    %134 = vector.load %arg3[%c368, %c0_54] : memref<848x64xbf16, #tpu.memory_space<vmem>>, vector<32x64xbf16>
    %135 = arith.truncf %133 : vector<16x32xf32> to vector<16x32xbf16>
    %cst_55 = arith.constant dense<0.000000e+00> : vector<16x64xf32>
    %136 = tpu.matmul %135, %134, %cst_55 {dimension_numbers = #tpu.dot_dimension_numbers<[1], [0], [0], [1], [0, 0, 1, 1], [], []>} : vector<16x32xbf16>, vector<32x64xbf16>, vector<16x64xf32> -> vector<16x64xf32>
    %c11 = arith.constant 11 : index
    %c0_56 = arith.constant 0 : index
    %137 = vector.load %arg4[%c11, %c0_56] : memref<30x64xf32, #tpu.memory_space<vmem>>, vector<1x64xf32>
    %138 = vector.broadcast %137 : vector<1x64xf32> to vector<16x64xf32>
    %139 = arith.addf %136, %138 : vector<16x64xf32>
    %140 = arith.mulf %139, %139 : vector<16x64xf32>
    %141 = arith.mulf %139, %140 : vector<16x64xf32>
    %cst_57 = arith.constant 4.471500e-02 : f32
    %142 = vector.broadcast %cst_57 : f32 to vector<16x64xf32>
    %143 = arith.mulf %142, %141 : vector<16x64xf32>
    %144 = arith.addf %139, %143 : vector<16x64xf32>
    %cst_58 = arith.constant 0.797884583 : f32
    %145 = vector.broadcast %cst_58 : f32 to vector<16x64xf32>
    %146 = arith.mulf %145, %144 : vector<16x64xf32>
    %147 = math.tanh %146 : vector<16x64xf32>
    %cst_59 = arith.constant 1.000000e+00 : f32
    %148 = vector.broadcast %cst_59 : f32 to vector<16x64xf32>
    %149 = arith.addf %148, %147 : vector<16x64xf32>
    %cst_60 = arith.constant 5.000000e-01 : f32
    %150 = vector.broadcast %cst_60 : f32 to vector<16x64xf32>
    %151 = arith.mulf %150, %149 : vector<16x64xf32>
    %152 = arith.mulf %139, %151 : vector<16x64xf32>
    %c400 = arith.constant 400 : index
    %c0_61 = arith.constant 0 : index
    %153 = vector.load %arg3[%c400, %c0_61] : memref<848x64xbf16, #tpu.memory_space<vmem>>, vector<64x32xbf16>
    %154 = arith.truncf %152 : vector<16x64xf32> to vector<16x64xbf16>
    %cst_62 = arith.constant dense<0.000000e+00> : vector<16x32xf32>
    %155 = tpu.matmul %154, %153, %cst_62 {dimension_numbers = #tpu.dot_dimension_numbers<[1], [0], [0], [1], [0, 0, 1, 1], [], []>} : vector<16x64xbf16>, vector<64x32xbf16>, vector<16x32xf32> -> vector<16x32xf32>
    %c12 = arith.constant 12 : index
    %c0_63 = arith.constant 0 : index
    %156 = vector.load %arg4[%c12, %c0_63] : memref<30x64xf32, #tpu.memory_space<vmem>>, vector<1x32xf32>
    %157 = vector.broadcast %156 : vector<1x32xf32> to vector<16x32xf32>
    %158 = arith.addf %155, %157 : vector<16x32xf32>
    %159 = arith.addf %133, %158 : vector<16x32xf32>
    %c13 = arith.constant 13 : index
    %c0_64 = arith.constant 0 : index
    %160 = vector.load %arg4[%c13, %c0_64] : memref<30x64xf32, #tpu.memory_space<vmem>>, vector<1x32xf32>
    %c14 = arith.constant 14 : index
    %c0_65 = arith.constant 0 : index
    %161 = vector.load %arg4[%c14, %c0_65] : memref<30x64xf32, #tpu.memory_space<vmem>>, vector<1x32xf32>
    %cst_66 = arith.constant dense<0.000000e+00> : vector<16xf32>
    %162 = vector.multi_reduction <add>, %159, %cst_66 [1] : vector<16x32xf32> to vector<16xf32>
    %163 = vector.shape_cast %162 : vector<16xf32> to vector<16x1xf32>
    %cst_67 = arith.constant 3.200000e+01 : f32
    %164 = vector.broadcast %cst_67 : f32 to vector<16x1xf32>
    %165 = arith.divf %163, %164 : vector<16x1xf32>
    %166 = vector.broadcast %165 : vector<16x1xf32> to vector<16x32xf32>
    %167 = arith.subf %159, %166 : vector<16x32xf32>
    %168 = arith.mulf %167, %167 : vector<16x32xf32>
    %cst_68 = arith.constant dense<0.000000e+00> : vector<16xf32>
    %169 = vector.multi_reduction <add>, %168, %cst_68 [1] : vector<16x32xf32> to vector<16xf32>
    %170 = vector.shape_cast %169 : vector<16xf32> to vector<16x1xf32>
    %cst_69 = arith.constant 3.200000e+01 : f32
    %171 = vector.broadcast %cst_69 : f32 to vector<16x1xf32>
    %172 = arith.divf %170, %171 : vector<16x1xf32>
    %173 = vector.broadcast %165 : vector<16x1xf32> to vector<16x32xf32>
    %174 = arith.subf %159, %173 : vector<16x32xf32>
    %cst_70 = arith.constant 9.99999996E-13 : f32
    %175 = vector.broadcast %cst_70 : f32 to vector<16x1xf32>
    %176 = arith.addf %172, %175 : vector<16x1xf32>
    %177 = math.rsqrt %176 : vector<16x1xf32>
    %178 = vector.broadcast %177 : vector<16x1xf32> to vector<16x32xf32>
    %179 = arith.mulf %174, %178 : vector<16x32xf32>
    %180 = vector.broadcast %160 : vector<1x32xf32> to vector<16x32xf32>
    %181 = arith.mulf %179, %180 : vector<16x32xf32>
    %182 = vector.broadcast %161 : vector<1x32xf32> to vector<16x32xf32>
    %183 = arith.addf %181, %182 : vector<16x32xf32>
    %184 = arith.truncf %183 : vector<16x32xf32> to vector<16x32xbf16>
    %cst_71 = arith.constant 0.000000e+00 : f32
    %185 = vector.broadcast %cst_71 : f32 to vector<16x32xf32>
    %c464 = arith.constant 464 : index
    %c0_72 = arith.constant 0 : index
    %186 = vector.load %arg3[%c464, %c0_72] : memref<848x64xbf16, #tpu.memory_space<vmem>>, vector<32x16xbf16>
    %cst_73 = arith.constant dense<0.000000e+00> : vector<16x16xf32>
    %187 = tpu.matmul %184, %186, %cst_73 {dimension_numbers = #tpu.dot_dimension_numbers<[1], [0], [0], [1], [0, 0, 1, 1], [], []>} : vector<16x32xbf16>, vector<32x16xbf16>, vector<16x16xf32> -> vector<16x16xf32>
    %c15 = arith.constant 15 : index
    %c0_74 = arith.constant 0 : index
    %188 = vector.load %arg4[%c15, %c0_74] : memref<30x64xf32, #tpu.memory_space<vmem>>, vector<1x16xf32>
    %189 = vector.broadcast %188 : vector<1x16xf32> to vector<16x16xf32>
    %190 = arith.addf %187, %189 : vector<16x16xf32>
    %c496 = arith.constant 496 : index
    %c0_75 = arith.constant 0 : index
    %191 = vector.load %arg3[%c496, %c0_75] : memref<848x64xbf16, #tpu.memory_space<vmem>>, vector<32x16xbf16>
    %cst_76 = arith.constant dense<0.000000e+00> : vector<16x16xf32>
    %192 = tpu.matmul %184, %191, %cst_76 {dimension_numbers = #tpu.dot_dimension_numbers<[1], [0], [0], [1], [0, 0, 1, 1], [], []>} : vector<16x32xbf16>, vector<32x16xbf16>, vector<16x16xf32> -> vector<16x16xf32>
    %c16 = arith.constant 16 : index
    %c0_77 = arith.constant 0 : index
    %193 = vector.load %arg4[%c16, %c0_77] : memref<30x64xf32, #tpu.memory_space<vmem>>, vector<1x16xf32>
    %194 = vector.broadcast %193 : vector<1x16xf32> to vector<16x16xf32>
    %195 = arith.addf %192, %194 : vector<16x16xf32>
    %c528 = arith.constant 528 : index
    %c0_78 = arith.constant 0 : index
    %196 = vector.load %arg3[%c528, %c0_78] : memref<848x64xbf16, #tpu.memory_space<vmem>>, vector<32x16xbf16>
    %cst_79 = arith.constant dense<0.000000e+00> : vector<16x16xf32>
    %197 = tpu.matmul %184, %196, %cst_79 {dimension_numbers = #tpu.dot_dimension_numbers<[1], [0], [0], [1], [0, 0, 1, 1], [], []>} : vector<16x32xbf16>, vector<32x16xbf16>, vector<16x16xf32> -> vector<16x16xf32>
    %c17 = arith.constant 17 : index
    %c0_80 = arith.constant 0 : index
    %198 = vector.load %arg4[%c17, %c0_80] : memref<30x64xf32, #tpu.memory_space<vmem>>, vector<1x16xf32>
    %199 = vector.broadcast %198 : vector<1x16xf32> to vector<16x16xf32>
    %200 = arith.addf %197, %199 : vector<16x16xf32>
    %201 = arith.truncf %190 : vector<16x16xf32> to vector<16x16xbf16>
    %202 = arith.truncf %195 : vector<16x16xf32> to vector<16x16xbf16>
    %cst_81 = arith.constant dense<0.000000e+00> : vector<16x16xf32>
    %203 = tpu.matmul %201, %202, %cst_81 {dimension_numbers = #tpu.dot_dimension_numbers<[1], [1], [0], [0], [0, 0, 1, 0], [], []>} : vector<16x16xbf16>, vector<16x16xbf16>, vector<16x16xf32> -> vector<16x16xf32>
    %cst_82 = arith.constant 2.500000e-01 : f32
    %204 = vector.broadcast %cst_82 : f32 to vector<16x16xf32>
    %205 = arith.mulf %203, %204 : vector<16x16xf32>
    %206 = arith.addf %205, %27 : vector<16x16xf32>
    %cst_83 = arith.constant dense<0xFF800000> : vector<16xf32>
    %207 = vector.multi_reduction <maximumf>, %206, %cst_83 [1] : vector<16x16xf32> to vector<16xf32>
    %208 = vector.shape_cast %207 : vector<16xf32> to vector<16x1xf32>
    %209 = vector.broadcast %208 : vector<16x1xf32> to vector<16x16xf32>
    %210 = arith.subf %206, %209 : vector<16x16xf32>
    %211 = math.exp %210 : vector<16x16xf32>
    %cst_84 = arith.constant dense<0.000000e+00> : vector<16xf32>
    %212 = vector.multi_reduction <add>, %211, %cst_84 [1] : vector<16x16xf32> to vector<16xf32>
    %213 = vector.shape_cast %212 : vector<16xf32> to vector<16x1xf32>
    %214 = tpu.reciprocal %213 {approx = true} : vector<16x1xf32> -> vector<16x1xf32>
    %215 = vector.broadcast %214 : vector<16x1xf32> to vector<16x16xf32>
    %216 = arith.mulf %211, %215 : vector<16x16xf32>
    %217 = arith.truncf %216 : vector<16x16xf32> to vector<16x16xbf16>
    %218 = arith.truncf %200 : vector<16x16xf32> to vector<16x16xbf16>
    %cst_85 = arith.constant dense<0.000000e+00> : vector<16x16xf32>
    %219 = tpu.matmul %217, %218, %cst_85 {dimension_numbers = #tpu.dot_dimension_numbers<[1], [0], [0], [1], [0, 0, 1, 1], [], []>} : vector<16x16xbf16>, vector<16x16xbf16>, vector<16x16xf32> -> vector<16x16xf32>
    %c560 = arith.constant 560 : index
    %c0_86 = arith.constant 0 : index
    %220 = vector.load %arg3[%c560, %c0_86] : memref<848x64xbf16, #tpu.memory_space<vmem>>, vector<16x32xbf16>
    %221 = arith.truncf %219 : vector<16x16xf32> to vector<16x16xbf16>
    %cst_87 = arith.constant dense<0.000000e+00> : vector<16x32xf32>
    %222 = tpu.matmul %221, %220, %cst_87 {dimension_numbers = #tpu.dot_dimension_numbers<[1], [0], [0], [1], [0, 0, 1, 1], [], []>} : vector<16x16xbf16>, vector<16x32xbf16>, vector<16x32xf32> -> vector<16x32xf32>
    %223 = arith.addf %185, %222 : vector<16x32xf32>
    %c576 = arith.constant 576 : index
    %c0_88 = arith.constant 0 : index
    %224 = vector.load %arg3[%c576, %c0_88] : memref<848x64xbf16, #tpu.memory_space<vmem>>, vector<32x16xbf16>
    %cst_89 = arith.constant dense<0.000000e+00> : vector<16x16xf32>
    %225 = tpu.matmul %184, %224, %cst_89 {dimension_numbers = #tpu.dot_dimension_numbers<[1], [0], [0], [1], [0, 0, 1, 1], [], []>} : vector<16x32xbf16>, vector<32x16xbf16>, vector<16x16xf32> -> vector<16x16xf32>
    %c18 = arith.constant 18 : index
    %c0_90 = arith.constant 0 : index
    %226 = vector.load %arg4[%c18, %c0_90] : memref<30x64xf32, #tpu.memory_space<vmem>>, vector<1x16xf32>
    %227 = vector.broadcast %226 : vector<1x16xf32> to vector<16x16xf32>
    %228 = arith.addf %225, %227 : vector<16x16xf32>
    %c608 = arith.constant 608 : index
    %c0_91 = arith.constant 0 : index
    %229 = vector.load %arg3[%c608, %c0_91] : memref<848x64xbf16, #tpu.memory_space<vmem>>, vector<32x16xbf16>
    %cst_92 = arith.constant dense<0.000000e+00> : vector<16x16xf32>
    %230 = tpu.matmul %184, %229, %cst_92 {dimension_numbers = #tpu.dot_dimension_numbers<[1], [0], [0], [1], [0, 0, 1, 1], [], []>} : vector<16x32xbf16>, vector<32x16xbf16>, vector<16x16xf32> -> vector<16x16xf32>
    %c19 = arith.constant 19 : index
    %c0_93 = arith.constant 0 : index
    %231 = vector.load %arg4[%c19, %c0_93] : memref<30x64xf32, #tpu.memory_space<vmem>>, vector<1x16xf32>
    %232 = vector.broadcast %231 : vector<1x16xf32> to vector<16x16xf32>
    %233 = arith.addf %230, %232 : vector<16x16xf32>
    %c640 = arith.constant 640 : index
    %c0_94 = arith.constant 0 : index
    %234 = vector.load %arg3[%c640, %c0_94] : memref<848x64xbf16, #tpu.memory_space<vmem>>, vector<32x16xbf16>
    %cst_95 = arith.constant dense<0.000000e+00> : vector<16x16xf32>
    %235 = tpu.matmul %184, %234, %cst_95 {dimension_numbers = #tpu.dot_dimension_numbers<[1], [0], [0], [1], [0, 0, 1, 1], [], []>} : vector<16x32xbf16>, vector<32x16xbf16>, vector<16x16xf32> -> vector<16x16xf32>
    %c20 = arith.constant 20 : index
    %c0_96 = arith.constant 0 : index
    %236 = vector.load %arg4[%c20, %c0_96] : memref<30x64xf32, #tpu.memory_space<vmem>>, vector<1x16xf32>
    %237 = vector.broadcast %236 : vector<1x16xf32> to vector<16x16xf32>
    %238 = arith.addf %235, %237 : vector<16x16xf32>
    %239 = arith.truncf %228 : vector<16x16xf32> to vector<16x16xbf16>
    %240 = arith.truncf %233 : vector<16x16xf32> to vector<16x16xbf16>
    %cst_97 = arith.constant dense<0.000000e+00> : vector<16x16xf32>
    %241 = tpu.matmul %239, %240, %cst_97 {dimension_numbers = #tpu.dot_dimension_numbers<[1], [1], [0], [0], [0, 0, 1, 0], [], []>} : vector<16x16xbf16>, vector<16x16xbf16>, vector<16x16xf32> -> vector<16x16xf32>
    %cst_98 = arith.constant 2.500000e-01 : f32
    %242 = vector.broadcast %cst_98 : f32 to vector<16x16xf32>
    %243 = arith.mulf %241, %242 : vector<16x16xf32>
    %244 = arith.addf %243, %27 : vector<16x16xf32>
    %cst_99 = arith.constant dense<0xFF800000> : vector<16xf32>
    %245 = vector.multi_reduction <maximumf>, %244, %cst_99 [1] : vector<16x16xf32> to vector<16xf32>
    %246 = vector.shape_cast %245 : vector<16xf32> to vector<16x1xf32>
    %247 = vector.broadcast %246 : vector<16x1xf32> to vector<16x16xf32>
    %248 = arith.subf %244, %247 : vector<16x16xf32>
    %249 = math.exp %248 : vector<16x16xf32>
    %cst_100 = arith.constant dense<0.000000e+00> : vector<16xf32>
    %250 = vector.multi_reduction <add>, %249, %cst_100 [1] : vector<16x16xf32> to vector<16xf32>
    %251 = vector.shape_cast %250 : vector<16xf32> to vector<16x1xf32>
    %252 = tpu.reciprocal %251 {approx = true} : vector<16x1xf32> -> vector<16x1xf32>
    %253 = vector.broadcast %252 : vector<16x1xf32> to vector<16x16xf32>
    %254 = arith.mulf %249, %253 : vector<16x16xf32>
    %255 = arith.truncf %254 : vector<16x16xf32> to vector<16x16xbf16>
    %256 = arith.truncf %238 : vector<16x16xf32> to vector<16x16xbf16>
    %cst_101 = arith.constant dense<0.000000e+00> : vector<16x16xf32>
    %257 = tpu.matmul %255, %256, %cst_101 {dimension_numbers = #tpu.dot_dimension_numbers<[1], [0], [0], [1], [0, 0, 1, 1], [], []>} : vector<16x16xbf16>, vector<16x16xbf16>, vector<16x16xf32> -> vector<16x16xf32>
    %c672 = arith.constant 672 : index
    %c0_102 = arith.constant 0 : index
    %258 = vector.load %arg3[%c672, %c0_102] : memref<848x64xbf16, #tpu.memory_space<vmem>>, vector<16x32xbf16>
    %259 = arith.truncf %257 : vector<16x16xf32> to vector<16x16xbf16>
    %cst_103 = arith.constant dense<0.000000e+00> : vector<16x32xf32>
    %260 = tpu.matmul %259, %258, %cst_103 {dimension_numbers = #tpu.dot_dimension_numbers<[1], [0], [0], [1], [0, 0, 1, 1], [], []>} : vector<16x16xbf16>, vector<16x32xbf16>, vector<16x32xf32> -> vector<16x32xf32>
    %261 = arith.addf %223, %260 : vector<16x32xf32>
    %c21 = arith.constant 21 : index
    %c0_104 = arith.constant 0 : index
    %262 = vector.load %arg4[%c21, %c0_104] : memref<30x64xf32, #tpu.memory_space<vmem>>, vector<1x32xf32>
    %263 = vector.broadcast %262 : vector<1x32xf32> to vector<16x32xf32>
    %264 = arith.addf %261, %263 : vector<16x32xf32>
    %265 = arith.addf %183, %264 : vector<16x32xf32>
    %c22 = arith.constant 22 : index
    %c0_105 = arith.constant 0 : index
    %266 = vector.load %arg4[%c22, %c0_105] : memref<30x64xf32, #tpu.memory_space<vmem>>, vector<1x32xf32>
    %c23 = arith.constant 23 : index
    %c0_106 = arith.constant 0 : index
    %267 = vector.load %arg4[%c23, %c0_106] : memref<30x64xf32, #tpu.memory_space<vmem>>, vector<1x32xf32>
    %cst_107 = arith.constant dense<0.000000e+00> : vector<16xf32>
    %268 = vector.multi_reduction <add>, %265, %cst_107 [1] : vector<16x32xf32> to vector<16xf32>
    %269 = vector.shape_cast %268 : vector<16xf32> to vector<16x1xf32>
    %cst_108 = arith.constant 3.200000e+01 : f32
    %270 = vector.broadcast %cst_108 : f32 to vector<16x1xf32>
    %271 = arith.divf %269, %270 : vector<16x1xf32>
    %272 = vector.broadcast %271 : vector<16x1xf32> to vector<16x32xf32>
    %273 = arith.subf %265, %272 : vector<16x32xf32>
    %274 = arith.mulf %273, %273 : vector<16x32xf32>
    %cst_109 = arith.constant dense<0.000000e+00> : vector<16xf32>
    %275 = vector.multi_reduction <add>, %274, %cst_109 [1] : vector<16x32xf32> to vector<16xf32>
    %276 = vector.shape_cast %275 : vector<16xf32> to vector<16x1xf32>
    %cst_110 = arith.constant 3.200000e+01 : f32
    %277 = vector.broadcast %cst_110 : f32 to vector<16x1xf32>
    %278 = arith.divf %276, %277 : vector<16x1xf32>
    %279 = vector.broadcast %271 : vector<16x1xf32> to vector<16x32xf32>
    %280 = arith.subf %265, %279 : vector<16x32xf32>
    %cst_111 = arith.constant 9.99999996E-13 : f32
    %281 = vector.broadcast %cst_111 : f32 to vector<16x1xf32>
    %282 = arith.addf %278, %281 : vector<16x1xf32>
    %283 = math.rsqrt %282 : vector<16x1xf32>
    %284 = vector.broadcast %283 : vector<16x1xf32> to vector<16x32xf32>
    %285 = arith.mulf %280, %284 : vector<16x32xf32>
    %286 = vector.broadcast %266 : vector<1x32xf32> to vector<16x32xf32>
    %287 = arith.mulf %285, %286 : vector<16x32xf32>
    %288 = vector.broadcast %267 : vector<1x32xf32> to vector<16x32xf32>
    %289 = arith.addf %287, %288 : vector<16x32xf32>
    %c688 = arith.constant 688 : index
    %c0_112 = arith.constant 0 : index
    %290 = vector.load %arg3[%c688, %c0_112] : memref<848x64xbf16, #tpu.memory_space<vmem>>, vector<32x64xbf16>
    %291 = arith.truncf %289 : vector<16x32xf32> to vector<16x32xbf16>
    %cst_113 = arith.constant dense<0.000000e+00> : vector<16x64xf32>
    %292 = tpu.matmul %291, %290, %cst_113 {dimension_numbers = #tpu.dot_dimension_numbers<[1], [0], [0], [1], [0, 0, 1, 1], [], []>} : vector<16x32xbf16>, vector<32x64xbf16>, vector<16x64xf32> -> vector<16x64xf32>
    %c24 = arith.constant 24 : index
    %c0_114 = arith.constant 0 : index
    %293 = vector.load %arg4[%c24, %c0_114] : memref<30x64xf32, #tpu.memory_space<vmem>>, vector<1x64xf32>
    %294 = vector.broadcast %293 : vector<1x64xf32> to vector<16x64xf32>
    %295 = arith.addf %292, %294 : vector<16x64xf32>
    %296 = arith.mulf %295, %295 : vector<16x64xf32>
    %297 = arith.mulf %295, %296 : vector<16x64xf32>
    %cst_115 = arith.constant 4.471500e-02 : f32
    %298 = vector.broadcast %cst_115 : f32 to vector<16x64xf32>
    %299 = arith.mulf %298, %297 : vector<16x64xf32>
    %300 = arith.addf %295, %299 : vector<16x64xf32>
    %cst_116 = arith.constant 0.797884583 : f32
    %301 = vector.broadcast %cst_116 : f32 to vector<16x64xf32>
    %302 = arith.mulf %301, %300 : vector<16x64xf32>
    %303 = math.tanh %302 : vector<16x64xf32>
    %cst_117 = arith.constant 1.000000e+00 : f32
    %304 = vector.broadcast %cst_117 : f32 to vector<16x64xf32>
    %305 = arith.addf %304, %303 : vector<16x64xf32>
    %cst_118 = arith.constant 5.000000e-01 : f32
    %306 = vector.broadcast %cst_118 : f32 to vector<16x64xf32>
    %307 = arith.mulf %306, %305 : vector<16x64xf32>
    %308 = arith.mulf %295, %307 : vector<16x64xf32>
    %c720 = arith.constant 720 : index
    %c0_119 = arith.constant 0 : index
    %309 = vector.load %arg3[%c720, %c0_119] : memref<848x64xbf16, #tpu.memory_space<vmem>>, vector<64x32xbf16>
    %310 = arith.truncf %308 : vector<16x64xf32> to vector<16x64xbf16>
    %cst_120 = arith.constant dense<0.000000e+00> : vector<16x32xf32>
    %311 = tpu.matmul %310, %309, %cst_120 {dimension_numbers = #tpu.dot_dimension_numbers<[1], [0], [0], [1], [0, 0, 1, 1], [], []>} : vector<16x64xbf16>, vector<64x32xbf16>, vector<16x32xf32> -> vector<16x32xf32>
    %c25 = arith.constant 25 : index
    %c0_121 = arith.constant 0 : index
    %312 = vector.load %arg4[%c25, %c0_121] : memref<30x64xf32, #tpu.memory_space<vmem>>, vector<1x32xf32>
    %313 = vector.broadcast %312 : vector<1x32xf32> to vector<16x32xf32>
    %314 = arith.addf %311, %313 : vector<16x32xf32>
    %315 = arith.addf %289, %314 : vector<16x32xf32>
    %c26 = arith.constant 26 : index
    %c0_122 = arith.constant 0 : index
    %316 = vector.load %arg4[%c26, %c0_122] : memref<30x64xf32, #tpu.memory_space<vmem>>, vector<1x32xf32>
    %c27 = arith.constant 27 : index
    %c0_123 = arith.constant 0 : index
    %317 = vector.load %arg4[%c27, %c0_123] : memref<30x64xf32, #tpu.memory_space<vmem>>, vector<1x32xf32>
    %cst_124 = arith.constant dense<0.000000e+00> : vector<16xf32>
    %318 = vector.multi_reduction <add>, %315, %cst_124 [1] : vector<16x32xf32> to vector<16xf32>
    %319 = vector.shape_cast %318 : vector<16xf32> to vector<16x1xf32>
    %cst_125 = arith.constant 3.200000e+01 : f32
    %320 = vector.broadcast %cst_125 : f32 to vector<16x1xf32>
    %321 = arith.divf %319, %320 : vector<16x1xf32>
    %322 = vector.broadcast %321 : vector<16x1xf32> to vector<16x32xf32>
    %323 = arith.subf %315, %322 : vector<16x32xf32>
    %324 = arith.mulf %323, %323 : vector<16x32xf32>
    %cst_126 = arith.constant dense<0.000000e+00> : vector<16xf32>
    %325 = vector.multi_reduction <add>, %324, %cst_126 [1] : vector<16x32xf32> to vector<16xf32>
    %326 = vector.shape_cast %325 : vector<16xf32> to vector<16x1xf32>
    %cst_127 = arith.constant 3.200000e+01 : f32
    %327 = vector.broadcast %cst_127 : f32 to vector<16x1xf32>
    %328 = arith.divf %326, %327 : vector<16x1xf32>
    %329 = vector.broadcast %321 : vector<16x1xf32> to vector<16x32xf32>
    %330 = arith.subf %315, %329 : vector<16x32xf32>
    %cst_128 = arith.constant 9.99999996E-13 : f32
    %331 = vector.broadcast %cst_128 : f32 to vector<16x1xf32>
    %332 = arith.addf %328, %331 : vector<16x1xf32>
    %333 = math.rsqrt %332 : vector<16x1xf32>
    %334 = vector.broadcast %333 : vector<16x1xf32> to vector<16x32xf32>
    %335 = arith.mulf %330, %334 : vector<16x32xf32>
    %336 = vector.broadcast %316 : vector<1x32xf32> to vector<16x32xf32>
    %337 = arith.mulf %335, %336 : vector<16x32xf32>
    %338 = vector.broadcast %317 : vector<1x32xf32> to vector<16x32xf32>
    %339 = arith.addf %337, %338 : vector<16x32xf32>
    %340 = tpu.iota {dimensions = array<i32: 1>} : vector<2x16xi32>
    %341 = tpu.iota {dimensions = array<i32: 0>} : vector<2x16xi32>
    %c8_i32 = arith.constant 8 : i32
    %342 = vector.broadcast %c8_i32 : i32 to vector<2x16xi32>
    %343 = arith.muli %341, %342 : vector<2x16xi32>
    %344 = arith.cmpi eq, %340, %343 : vector<2x16xi32>
    %cst_129 = arith.constant 1.000000e+00 : f32
    %cst_130 = arith.constant 0.000000e+00 : f32
    %345 = vector.broadcast %cst_129 : f32 to vector<2x16xf32>
    %346 = vector.broadcast %cst_130 : f32 to vector<2x16xf32>
    %347 = arith.select %344, %345, %346 : vector<2x16xi1>, vector<2x16xf32>
    %348 = arith.truncf %347 : vector<2x16xf32> to vector<2x16xbf16>
    %349 = arith.truncf %339 : vector<16x32xf32> to vector<16x32xbf16>
    %cst_131 = arith.constant dense<0.000000e+00> : vector<2x32xf32>
    %350 = tpu.matmul %348, %349, %cst_131 {dimension_numbers = #tpu.dot_dimension_numbers<[1], [0], [0], [1], [0, 0, 1, 1], [], []>} : vector<2x16xbf16>, vector<16x32xbf16>, vector<2x32xf32> -> vector<2x32xf32>
    %c784 = arith.constant 784 : index
    %c0_132 = arith.constant 0 : index
    %351 = vector.load %arg3[%c784, %c0_132] : memref<848x64xbf16, #tpu.memory_space<vmem>>, vector<32x32xbf16>
    %352 = arith.truncf %350 : vector<2x32xf32> to vector<2x32xbf16>
    %cst_133 = arith.constant dense<0.000000e+00> : vector<2x32xf32>
    %353 = tpu.matmul %352, %351, %cst_133 {dimension_numbers = #tpu.dot_dimension_numbers<[1], [0], [0], [1], [0, 0, 1, 1], [], []>} : vector<2x32xbf16>, vector<32x32xbf16>, vector<2x32xf32> -> vector<2x32xf32>
    %c28 = arith.constant 28 : index
    %c0_134 = arith.constant 0 : index
    %354 = vector.load %arg4[%c28, %c0_134] : memref<30x64xf32, #tpu.memory_space<vmem>>, vector<1x32xf32>
    %355 = vector.broadcast %354 : vector<1x32xf32> to vector<2x32xf32>
    %356 = arith.addf %353, %355 : vector<2x32xf32>
    %357 = math.tanh %356 : vector<2x32xf32>
    %c816 = arith.constant 816 : index
    %c0_135 = arith.constant 0 : index
    %358 = vector.load %arg3[%c816, %c0_135] : memref<848x64xbf16, #tpu.memory_space<vmem>>, vector<32x2xbf16>
    %359 = arith.truncf %357 : vector<2x32xf32> to vector<2x32xbf16>
    %cst_136 = arith.constant dense<0.000000e+00> : vector<2x2xf32>
    %360 = tpu.matmul %359, %358, %cst_136 {dimension_numbers = #tpu.dot_dimension_numbers<[1], [0], [0], [1], [0, 0, 1, 1], [], []>} : vector<2x32xbf16>, vector<32x2xbf16>, vector<2x2xf32> -> vector<2x2xf32>
    %c29 = arith.constant 29 : index
    %c0_137 = arith.constant 0 : index
    %361 = vector.load %arg4[%c29, %c0_137] : memref<30x64xf32, #tpu.memory_space<vmem>>, vector<1x2xf32>
    %362 = vector.broadcast %361 : vector<1x2xf32> to vector<2x2xf32>
    %363 = arith.addf %360, %362 : vector<2x2xf32>
    %cst_138 = arith.constant dense<0xFF800000> : vector<2xf32>
    %364 = vector.multi_reduction <maximumf>, %363, %cst_138 [1] : vector<2x2xf32> to vector<2xf32>
    %365 = vector.shape_cast %364 : vector<2xf32> to vector<2x1xf32>
    %366 = vector.broadcast %365 : vector<2x1xf32> to vector<2x2xf32>
    %367 = arith.subf %363, %366 : vector<2x2xf32>
    %368 = math.exp %367 : vector<2x2xf32>
    %cst_139 = arith.constant dense<0.000000e+00> : vector<2xf32>
    %369 = vector.multi_reduction <add>, %368, %cst_139 [1] : vector<2x2xf32> to vector<2xf32>
    %370 = vector.shape_cast %369 : vector<2xf32> to vector<2x1xf32>
    %371 = math.log %370 : vector<2x1xf32>
    %372 = arith.addf %371, %365 : vector<2x1xf32>
    %c0_140 = arith.constant 0 : index
    %c0_141 = arith.constant 0 : index
    %373 = vector.load %arg2[%c0_140, %c0_141] : memref<2x2xf32, #tpu.memory_space<vmem>>, vector<2x2xf32>
    %374 = arith.mulf %363, %373 : vector<2x2xf32>
    %cst_142 = arith.constant dense<0.000000e+00> : vector<2xf32>
    %375 = vector.multi_reduction <add>, %374, %cst_142 [1] : vector<2x2xf32> to vector<2xf32>
    %376 = vector.shape_cast %375 : vector<2xf32> to vector<2x1xf32>
    %377 = arith.subf %372, %376 : vector<2x1xf32>
    %378 = vector.shape_cast %377 : vector<2x1xf32> to vector<1x2x1xf32>
    %cst_143 = arith.constant dense<0.000000e+00> : vector<1xf32>
    %379 = vector.multi_reduction <add>, %378, %cst_143 [1, 2] : vector<1x2x1xf32> to vector<1xf32>
    %380 = vector.shape_cast %379 : vector<1xf32> to vector<1x1x1xf32>
    %381 = vector.extract %380[0, 0, 0] : f32 from vector<1x1x1xf32>
    %382 = vector.broadcast %381 : f32 to vector<1x1xf32>
    %cst_144 = arith.constant 2.000000e+00 : f32
    %383 = vector.broadcast %cst_144 : f32 to vector<1x1xf32>
    %384 = arith.divf %382, %383 : vector<1x1xf32>
    %c0_145 = arith.constant 0 : index
    %c0_146 = arith.constant 0 : index
    %385 = vector.load %arg5[%c0_145, %c0_146] : memref<1x1xf32, #tpu.memory_space<vmem>>, vector<1x1xf32>
    tpu.vector_store %arg5[%c0_145, %c0_146], %384 {strides = array<i32>} : memref<1x1xf32, #tpu.memory_space<vmem>>, vector<1x1xf32>,
    return
  }
}

</mosaic_0001>

<bundles_post_ra>
// kernel: mul.22
= control target key start
LH: loop header
LB: loop body
LE: loop exit
PB: predicated region body
PF: predicated region fallthrough
CT: control target
= control target key end

     0   :  { %vm7_vm0 = vcmask 64512   ;;  %vm13_vm1 = vcmask 130112   ;;  %s39_s0 = inlined_call_operand.vmem [shape: f32[2,8], index: 0, kind: input, shape index: {}]   ;;  %s40_s1 = inlined_call_operand.vmem [shape: f32[16], index: 1, kind: output, shape index: {}]  }
   0x1   :  { %v4_v0 = vld [vmem:[%s39_s0] sm:$0x3]  ;;  %s22_s0 = smov 8  }
   0x2   :  { %5 = vst [vmem:[#allocation1] sm:$0x3] %v4_v0 }
   0x9   :  { %v10_v1 = vld [vmem:[#allocation1 + $0x1] sm:$0x1]   ;;  %v6_v2 = vld [vmem:[#allocation1] sm:$0x1]  }
   0xa   :  { %11 = vrot.lane.b32.xlu0 %v10_v1, %s22_s0  ;;  %8 = vst.msk [vmem:[#allocation0] sm:$0x1] %vm7_vm0, %v6_v2  }
  0x7c   :  { %v12_v3 = vpop.permute.xlu0 %11  }
  0x7d   :  { %14 = vst.msk [vmem:[#allocation0] sm:$0x1] %vm13_vm1, %v12_v3  }
  0x84   :  { %v18_v4 = vld [vmem:[#allocation0] sm:$0x1] }
  0x85   :  { %20 = vst [vmem:[%s40_s1] sm:$0x1] %v18_v4 }

// kernel: eq.1
= control target key start
LH: loop header
LB: loop body
LE: loop exit
PB: predicated region body
PF: predicated region fallthrough
CT: control target
= control target key end

     0   :  { %vm7_vm0 = vcmask 64512   ;;  %vm13_vm1 = vcmask 130112   ;;  %s39_s0 = inlined_call_operand.vmem [shape: s32[2,8], index: 0, kind: input, shape index: {}]   ;;  %s40_s1 = inlined_call_operand.vmem [shape: s32[16], index: 1, kind: output, shape index: {}]  }
   0x1   :  { %v4_v0 = vld [vmem:[%s39_s0] sm:$0x3]  ;;  %s22_s0 = smov 8  }
   0x2   :  { %5 = vst [vmem:[#allocation1] sm:$0x3] %v4_v0 }
   0x9   :  { %v10_v1 = vld [vmem:[#allocation1 + $0x1] sm:$0x1]   ;;  %v6_v2 = vld [vmem:[#allocation1] sm:$0x1]  }
   0xa   :  { %11 = vrot.lane.b32.xlu0 %v10_v1, %s22_s0  ;;  %8 = vst.msk [vmem:[#allocation0] sm:$0x1] %vm7_vm0, %v6_v2  }
  0x7c   :  { %v12_v3 = vpop.permute.xlu0 %11  }
  0x7d   :  { %14 = vst.msk [vmem:[#allocation0] sm:$0x1] %vm13_vm1, %v12_v3  }
  0x84   :  { %v18_v4 = vld [vmem:[#allocation0] sm:$0x1] }
  0x85   :  { %20 = vst [vmem:[%s40_s1] sm:$0x1] %v18_v4 }

// kernel: forward.1
= control target key start
LH: loop header
LB: loop body
LE: loop exit
PB: predicated region body
PF: predicated region fallthrough
CT: control target
= control target key end

     0   :  { %v2972_v1 = vmov 0   ;;  %vm105_vm0 = vcmask 130048   ;;  %s3532_s0 = inlined_call_operand.vmem [shape: bf16[16,144], index: 0, kind: input, shape index: {}]   ;;  %s3533_s1 = inlined_call_operand.vmem [shape: f32[16,16], index: 1, kind: input, shape index: {}]   ;;  %s3534_s2 = inlined_call_operand.vmem [shape: f32[2,2], index: 2, kind: input, shape index: {}]   ;;  %s3535_s3 = inlined_call_operand.vmem [shape: bf16[848,64], index: 3, kind: input, shape index: {}]   ;;  %s3536_s4 = inlined_call_operand.vmem [shape: f32[30,64], index: 4, kind: input, shape index: {}]   ;;  %s3537_s5 = inlined_call_operand.hbm [shape: f32[1,1], index: 5, kind: output, shape index: {}]  }
   0x1   :  { %v2826_v0 = vld [vmem:[%s3535_s3] sm:$0xff]   ;;  %109 = vmatprep.subr.bf16.mxu0 %v2972_v1  ;;  %v2827_v2 = vld [vmem:[%s3535_s3 + $0x8] sm:$0xff]   ;;  %v2828_v3 = vld [vmem:[%s3535_s3 + $0x10] sm:$0xff]  }
   0x2   :  { %110 = vmatpush1.bf16.msra.mxu0 %v2826_v0  ;;  %v2829_v4 = vld [vmem:[%s3535_s3 + $0x18] sm:$0xff]   ;;  %v2837_v5 = vld [vmem:[%s3532_s0 + $0x4] ss:$8 sps:$4 sm:$0xff]   ;;  %v2832_v8 = vld [vmem:[%s3535_s3 + $0x30] sm:$0xff]  }
   0x3   :  { %111 = vmatprep.subr.bf16.mxu0 %v2972_v1  ;;  %v2830_v6 = vld [vmem:[%s3535_s3 + $0x20] sm:$0xff]   ;;  %2400 = vmatprep.mubr.msk.bf16.mxu0 %vm105_vm0, %v2837_v5  ;;  %v2831_v7 = vld [vmem:[%s3535_s3 + $0x28] sm:$0xff]   ;;  %v2833_v9 = vld [vmem:[%s3535_s3 + $0x38] sm:$0xff]  }
   0x4   :  { %v2834_v10 = vld [vmem:[%s3535_s3 + $0x40] sm:$0xff]  }
   0x5   :  { %v2835_v11 = vld [vmem:[%s3532_s0] ss:$8 sps:$4 sm:$0xff]  }
   0x6   :  { %112 = vmatpush1.bf16.msra.mxu0 %v2827_v2 }
   0x7   :  { %113 = vmatprep.subr.bf16.mxu0 %v2972_v1 }
   0xa   :  { %114 = vmatpush1.bf16.msra.mxu0 %v2828_v3 }
   0xb   :  { %115 = vmatprep.subr.bf16.mxu0 %v2972_v1 }
   0xe   :  { %116 = vmatpush1.bf16.msra.mxu0 %v2829_v4 }
   0xf   :  { %117 = vmatprep.subr.bf16.mxu0 %v2972_v1 }
  0x12   :  { %118 = vmatpush1.bf16.msra.mxu0 %v2830_v6 }
  0x13   :  { %119 = vmatprep.subr.bf16.mxu0 %v2972_v1 }
  0x16   :  { %120 = vmatpush1.bf16.msra.mxu0 %v2831_v7 }
  0x17   :  { %121 = vmatprep.subr.bf16.mxu0 %v2972_v1 }
  0x1a   :  { %122 = vmatpush1.bf16.msra.mxu0 %v2832_v8 }
  0x1b   :  { %123 = vmatprep.subr.bf16.mxu0 %v2972_v1 }
  0x1e   :  { %124 = vmatpush1.bf16.msra.mxu0 %v2833_v9 }
  0x1f   :  { %125 = vmatprep.subr.bf16.mxu0 %v2972_v1 }
  0x22   :  { %126 = vmatpush1.bf16.msra.mxu0 %v2834_v10 }
  0x25   :  { %142 = vmatmul.mubr.bf16.vlgmr.msra.gmra.mrb[0].mxu0 %v2835_v11 }
  0x26   :  { %10 = vsyncpa [#allocation3], 0  ;;  %vm152_vm1 = vcmask 261120   ;;  %v2838_v28 = vld [vmem:[%s3535_s3 + $0x48] sm:$0xff]   ;;  %v2839_v29 = vld [vmem:[%s3535_s3 + $0x80] sm:$0xff]   ;;  %v2973_v30 = vmov 0.0  }
  0x27   :  { %2590 = vmatprep.subr.bf16.mxu1 %v2973_v30  ;;  %2626 = vmatprep.subr.bf16.mxu0 %v2973_v30  ;;  %v2840_v31 = vld [vmem:[%s3535_s3 + $0x50] sm:$0xff]   ;;  %v2841_v32 = vld [vmem:[%s3535_s3 + $0x88] sm:$0xff]   ;;  %vm2974_vm2 = vmmov 0   ;;  %v2401_v41 = vld [vmem:[%s3536_s4] ss:$0 sm:$0xff]  ;;  %vm1089_vm3 = vcmask 523264  }
  0x28   :  { %2591 = vmatpush3.bf16.msra.mxu1 %v2838_v28  ;;  %2627 = vmatpush3.bf16.msra.mxu0 %v2839_v29  ;;  %v2402_v45 = vld [vmem:[%s3536_s4 + $0x1] ss:$0 sm:$0xff]  ;;  %v2842_v49 = vld [vmem:[%s3535_s3 + $0x58] sm:$0xff]   ;;  %v2845_v53 = vld [vmem:[%s3535_s3 + $0xa8] sm:$0xff]   ;;  %vm2340_vm5 = vcmask 9216   ;;  %vm2359_vm6 = vcmask 1024  }
  0x29   :  { %2592 = vmatprep.subr.bf16.mxu1 %v2973_v30  ;;  %2628 = vmatprep.subr.bf16.mxu0 %v2973_v30  ;;  %v2843_v50 = vld [vmem:[%s3535_s3 + $0xa0] sm:$0xff]   ;;  %v2846_v54 = vld [vmem:[%s3535_s3 + $0x68] sm:$0xff]   ;;  %v2847_v55 = vld [vmem:[%s3535_s3 + $0x70] sm:$0xff]   ;;  %vm2373_vm7 = vcmask 0  }
  0x2a   :  { %2594 = vmatprep.mubr.msk.bf16.mxu1 %vm2974_vm2, %v2973_v30  ;;  %2630 = vmatprep.mubr.msk.bf16.mxu0 %vm2974_vm2, %v2973_v30  ;;  %v2844_v52 = vld [vmem:[%s3535_s3 + $0x60] sm:$0xff]  }
  0x2b   :  { %v2403_v56 = vld [vmem:[%s3536_s4 + $0x2] ss:$0 sm:$0xff]  ;;  %v2417_v58 = vld [vmem:[%s3536_s4 + $0x5] ss:$0 sm:$0xff]  ;;  %v2407_v8 = vld [vmem:[%s3536_s4 + $0x3] ss:$0 sm:$0xff] }
  0x2c   :  { %2593 = vmatpush3.bf16.msra.mxu1 %v2840_v31  ;;  %2629 = vmatpush3.bf16.msra.mxu0 %v2841_v32  ;;  %v2425_v10 = vld [vmem:[%s3536_s4 + $0x7] ss:$0 sm:$0xff] }
  0x2d   :  { %2598 = vmatprep.subr.bf16.mxu1 %v2973_v30  ;;  %2642 = vmatprep.subr.bf16.mxu0 %v2973_v30 }
  0xf8   :  { %v143_v12 = vpop.f32.mrb[0].mxu0 }
  0xf9   :  { %v145_v13 = vpop.f32.mrb[1].mxu0  ;;  %v153_v14 = vsel %vm152_vm1, %v143_v12, 0.0 }
  0xfa   :  { %154 = vadd.xlane.f32.xlu0 %v153_v14  ;;  %v146_v15 = vpop.f32.mrb[2].mxu0 }
  0xfb   :  { %v148_v16 = vpop.f32.mrb[3].mxu0  ;;  %v156_v17 = vsel %vm152_vm1, %v146_v15, 0.0 }
  0xfe   :  { %157 = vadd.xlane.f32.xlu0 %v156_v17 }
 0x187   :  { %v155_v18 = vpop.xlane.xlu0 %154 }
 0x188   :  { %v160_v19 = vmul.f32 0.03125, %v155_v18 }
 0x18a   :  { %v162_v20 = vsub.f32 %v143_v12, %v160_v19 }
 0x18b   :  { %v158_v21 = vpop.xlane.xlu0 %157 }
 0x18c   :  { %v161_v22 = vmul.f32 0.03125, %v158_v21  ;;  %v164_v23 = vmul.f32 %v162_v20, %v162_v20 }
 0x18e   :  { %v163_v24 = vsub.f32 %v146_v15, %v161_v22  ;;  %v166_v25 = vsel %vm152_vm1, %v164_v23, 0.0 }
 0x18f   :  { %167 = vadd.xlane.f32.xlu1 %v166_v25  ;;  %v2411_v25 = vld [vmem:[%s3536_s4 + $0x4] ss:$0 sm:$0xff] }
 0x190   :  { %v165_v26 = vmul.f32 %v163_v24, %v163_v24 }
 0x192   :  { %v169_v27 = vsel %vm152_vm1, %v165_v26, 0.0 }
 0x193   :  { %170 = vadd.xlane.f32.xlu1 %v169_v27 }
 0x21c   :  { %v168_v33 = vpop.xlane.xlu1 %167 }
 0x21d   :  { %v172_v34 = vmul.f32 0.03125, %v168_v33 }
 0x21f   :  { %v174_v35 = vadd.f32 1e-12, %v172_v34 }
 0x220   :  { %v171_v36 = vpop.xlane.xlu1 %170 }
 0x221   :  { %2882 = vrsqrt.f32 %v174_v35  ;;  %v173_v37 = vmul.f32 0.03125, %v171_v36  ;;  %v3155_v35 = vld [vmem:[%s3533_s1] sm:$0xff] }
 0x223   :  { %v175_v38 = vadd.f32 1e-12, %v173_v37 }
 0x225   :  { %2884 = vrsqrt.f32 %v175_v38 }
 0x22b   :  { %v2883_v39 = vpop.eup %2882 }
 0x22c   :  { %v178_v40 = vmul.f32 %v2883_v39, %v162_v20  ;;  %v3160_v39 = vld [vmem:[%s3533_s1 + $0x8] sm:$0xff] }
 0x22e   :  { %v184_v43 = vmul.f32 %v2401_v41, %v178_v40 }
 0x22f   :  { %v2885_v42 = vpop.eup %2884 }
 0x230   :  { %v179_v44 = vmul.f32 %v2885_v42, %v163_v24  ;;  %v3072_v47 = vadd.f32 %v2402_v45, %v184_v43 }
 0x232   :  { %v185_v46 = vmul.f32 %v2401_v41, %v179_v44 }
 0x234   :  { %v3074_v48 = vadd.f32 %v2402_v45, %v185_v46 }
 0x236   :  { %v3084_v51 = vpack.c.bf16 %v3074_v48, %v3072_v47 }
 0x238   :  { %2595 = vmatmul.mubr.msk.bf16.vlgmr.msra.gmra.mrb[0].mxu1 %vm152_vm1, %v3084_v51  ;;  %2631 = vmatmul.mubr.msk.bf16.vlgmr.msra.gmra.mrb[4].mxu0 %vm152_vm1, %v3084_v51 }
 0x239   :  { %2599 = vmatpush3.bf16.msra.mxu1 %v2842_v49  ;;  %2643 = vmatpush3.bf16.msra.mxu0 %v2843_v50 }
 0x23a   :  { %2600 = vmatprep.subr.bf16.mxu1 %v2973_v30  ;;  %2644 = vmatprep.subr.bf16.mxu0 %v2973_v30 }
 0x23b   :  { %2602 = vmatprep.mubr.msk.bf16.mxu1 %vm2974_vm2, %v2973_v30  ;;  %2646 = vmatprep.mubr.msk.bf16.mxu0 %vm2974_vm2, %v2973_v30 }
 0x23d   :  { %2601 = vmatpush3.bf16.msra.mxu1 %v2844_v52  ;;  %2645 = vmatpush3.bf16.msra.mxu0 %v2845_v53 }
 0x23e   :  { %2606 = vmatprep.subr.bf16.mxu1 %v2973_v30  ;;  %2656 = vmatprep.subr.bf16.mxu0 %v2973_v30 }
 0x240   :  { %2603 = vmatmul.mubr.msk.bf16.vlgmr.msra.gmra.mrb[4].mxu1 %vm152_vm1, %v3084_v51  ;;  %2647 = vmatmul.mubr.msk.bf16.vlgmr.msra.gmra.mrb[8].mxu0 %vm152_vm1, %v3084_v51 }
 0x241   :  { %2607 = vmatpush3.bf16.msra.mxu1 %v2846_v54  ;;  %2610 = vmatprep.mubr.msk.bf16.mxu1 %vm2974_vm2, %v2973_v30 }
 0x242   :  { %2608 = vmatprep.subr.bf16.mxu1 %v2973_v30  ;;  %2658 = vmatprep.mubr.msk.bf16.mxu0 %vm2974_vm2, %v2973_v30 }
 0x245   :  { %2609 = vmatpush3.bf16.msra.mxu1 %v2847_v55 }
 0x246   :  { %2614 = vmatprep.subr.bf16.mxu1 %v2973_v30 }
 0x248   :  { %2611 = vmatmul.mubr.msk.bf16.vlgmr.msra.gmra.mrb[8].mxu1 %vm152_vm1, %v3084_v51 }
 0x249   :  { %2616 = vmatprep.mubr.msk.bf16.mxu1 %vm2974_vm2, %v2973_v30 }
 0x30b   :  { %v253_v57 = vpop.f32.mrb[0].mxu1  ;;  %v563_v59 = vpop.f32.mrb[4].mxu0 }
 0x30c   :  { %v2596_v60 = vpop.f32.mrb[1].mxu1  ;;  %v2632_v61 = vpop.f32.mrb[5].mxu0  ;;  %v254_v0 = vadd.f32 %v2403_v56, %v253_v57  ;;  %v3130_v1 = vadd.f32 %v2417_v58, %v563_v59 }
 0x30d   :  { %v256_v62 = vpop.f32.mrb[2].mxu1  ;;  %v566_v63 = vpop.f32.mrb[6].mxu0 }
 0x30e   :  { %v257_v2 = vadd.f32 %v2403_v56, %v256_v62  ;;  %v3132_v3 = vadd.f32 %v2417_v58, %v566_v63  ;;  %v2597_v4 = vpop.f32.mrb[3].mxu1  ;;  %v2633_v5 = vpop.f32.mrb[7].mxu0 }
 0x30f   :  { %v2849_v5 = vld [vmem:[%s3535_s3 + $0x98] sm:$0xff]  }
 0x310   :  { %v384_v6 = vpack.c.bf16 %v257_v2, %v254_v0  ;;  %v694_v7 = vpack.c.bf16 %v3132_v3, %v3130_v1  ;;  %v2848_v2 = vld [vmem:[%s3535_s3 + $0x90] sm:$0xff]  }
 0x313   :  { %v315_v9 = vpop.f32.mrb[4].mxu1  ;;  %v687_v11 = vpop.f32.mrb[8].mxu0 }
 0x314   :  { %v2604_v12 = vpop.f32.mrb[5].mxu1  ;;  %v2648_v13 = vpop.f32.mrb[9].mxu0  ;;  %v316_v16 = vadd.f32 %v2407_v8, %v315_v9  ;;  %v688_v17 = vadd.f32 %v2425_v10, %v687_v11 }
 0x315   :  { %v318_v14 = vpop.f32.mrb[6].mxu1  ;;  %v690_v15 = vpop.f32.mrb[10].mxu0  ;;  %v2421_v12 = vld [vmem:[%s3536_s4 + $0x6] ss:$0 sm:$0xff] }
 0x316   :  { %v319_v18 = vadd.f32 %v2407_v8, %v318_v14  ;;  %v691_v19 = vadd.f32 %v2425_v10, %v690_v15  ;;  %v2605_v20 = vpop.f32.mrb[7].mxu1  ;;  %v2649_v21 = vpop.f32.mrb[11].mxu0 }
 0x318   :  { %v385_v22 = vpack.c.bf16 %v319_v18, %v316_v16  ;;  %v770_v23 = vpack.c.bf16 %v691_v19, %v688_v17 }
 0x31a   :  { %2657 = vmatpush3.bf16.msra.mxu0 %v770_v23  ;;  %v390_v24 = vsel %vm105_vm0, %v385_v22, 0 }
 0x31b   :  { %v377_v26 = vpop.f32.mrb[8].mxu1  ;;  %2615 = vmatpush3.bf16.xpose.msra.mxu1 %v390_v24  ;;  %2668 = vmatprep.subr.bf16.mxu0 %v2973_v30 }
 0x31c   :  { %v2612_v27 = vpop.f32.mrb[9].mxu1  ;;  %2620 = vmatprep.subr.bf16.mxu1 %v2973_v30  ;;  %v378_v29 = vadd.f32 %v2411_v25, %v377_v26 }
 0x31d   :  { %v380_v28 = vpop.f32.mrb[10].mxu1 }
 0x31e   :  { %v381_v31 = vadd.f32 %v2411_v25, %v380_v28  ;;  %v2613_v32 = vpop.f32.mrb[11].mxu1 }
 0x320   :  { %v460_v33 = vpack.c.bf16 %v381_v31, %v378_v29 }
 0x322   :  { %2617 = vmatmul.mubr.msk.bf16.vlgmr.msra.gmra.mrb[12].mxu1 %vm105_vm0, %v384_v6 }
 0x323   :  { %2621 = vmatpush3.bf16.msra.mxu1 %v460_v33  ;;  %2622 = vmatprep.mubr.msk.bf16.mxu1 %vm2974_vm2, %v2973_v30 }
 0x324   :  { %2634 = vmatprep.subr.bf16.mxu1 %v2973_v30 }
 0x3f5   :  { %v426_v34 = vpop.f32.mrb[12].mxu1 }
 0x3f6   :  { %v433_v36 = vmul.f32 0.25, %v426_v34  ;;  %v2618_v37 = vpop.f32.mrb[13].mxu1 }
 0x3f7   :  { %v429_v38 = vpop.f32.mrb[14].mxu1 }
 0x3f8   :  { %v434_v40 = vmul.f32 0.25, %v429_v38  ;;  %v2619_v41 = vpop.f32.mrb[15].mxu1  ;;  %v435_v42 = vadd.f32 %v433_v36, %v3155_v35 }
 0x3fa   :  { %v437_v43 = vsel %vm105_vm0, %v435_v42, -inf  ;;  %v436_v44 = vadd.f32 %v434_v40, %v3160_v39 }
 0x3fb   :  { %438 = vmax.xlane.f32.xlu0 %v437_v43 }
 0x3fc   :  { %v440_v45 = vsel %vm105_vm0, %v436_v44, -inf }
 0x3fd   :  { %441 = vmax.xlane.f32.xlu1 %v440_v45 }
 0x488   :  { %v439_v46 = vpop.xlane.xlu0 %438 }
 0x489   :  { %v443_v49 = vsub.f32 %v435_v42, %v439_v46  ;;  %v2850_v46 = vld [vmem:[%s3535_s3 + $0x78] sm:$0xff]  }
 0x48a   :  { %v442_v50 = vpop.xlane.xlu1 %441 }
 0x48b   :  { %v445_v52 = vmul.f32 1.442695, %v443_v49  ;;  %v444_v53 = vsub.f32 %v436_v44, %v442_v50  ;;  %v2851_v50 = vld [vmem:[%s3535_s3 + $0xb0] sm:$0xff]  }
 0x48d   :  { %2886 = vpow2.f32 %v445_v52  ;;  %v447_v54 = vmul.f32 1.442695, %v444_v53 }
 0x48f   :  { %2888 = vpow2.f32 %v447_v54 }
 0x497   :  { %v2887_v55 = vpop.eup %2886 }
 0x498   :  { %v449_v56 = vsel %vm105_vm0, %v2887_v55, 0.0 }
 0x499   :  { %v2889_v57 = vpop.eup %2888  ;;  %450 = vadd.xlane.f32.xlu0 %v449_v56 }
 0x49a   :  { %v452_v58 = vsel %vm105_vm0, %v2889_v57, 0.0 }
 0x49b   :  { %453 = vadd.xlane.f32.xlu1 %v452_v58 }
 0x526   :  { %v451_v59 = vpop.xlane.xlu0 %450 }
 0x527   :  { %2890 = vrcp.f32 %v451_v59 }
 0x528   :  { %v454_v60 = vpop.xlane.xlu1 %453 }
 0x529   :  { %2892 = vrcp.f32 %v454_v60 }
 0x531   :  { %v2891_v61 = vpop.eup %2890 }
 0x532   :  { %v457_v63 = vmul.f32 %v2891_v61, %v2887_v55 }
 0x533   :  { %v2893_v62 = vpop.eup %2892 }
 0x534   :  { %v458_v0 = vmul.f32 %v2893_v62, %v2889_v57  ;;  %v2435_v62 = vld [vmem:[%s3536_s4 + $0x8] ss:$0 sm:$0xff] }
 0x536   :  { %v459_v4 = vpack.c.bf16 %v458_v0, %v457_v63 }
 0x538   :  { %2623 = vmatmul.mubr.msk.bf16.vlgmr.msra.gmra.mrb[16].mxu1 %vm105_vm0, %v459_v4 }
 0x539   :  { %2635 = vmatpush3.bf16.msra.mxu1 %v2848_v2  ;;  %2638 = vmatprep.mubr.msk.bf16.mxu1 %vm2974_vm2, %v2973_v30 }
 0x53a   :  { %2636 = vmatprep.subr.bf16.mxu1 %v2973_v30 }
 0x53d   :  { %2637 = vmatpush3.bf16.msra.mxu1 %v2849_v5 }
 0x53e   :  { %2650 = vmatprep.subr.bf16.mxu1 %v2973_v30 }
 0x540   :  { %2639 = vmatmul.mubr.msk.bf16.vlgmr.msra.gmra.mrb[20].mxu1 %vm152_vm1, %v3084_v51 }
 0x541   :  { %2652 = vmatprep.mubr.msk.bf16.mxu1 %vm2974_vm2, %v2973_v30 }
 0x60b   :  { %v498_v6 = vpop.f32.mrb[16].mxu1 }
 0x60c   :  { %v2624_v8 = vpop.f32.mrb[17].mxu1 }
 0x60d   :  { %v501_v9 = vpop.f32.mrb[18].mxu1 }
 0x60e   :  { %v507_v10 = vpack.c.bf16 %v501_v9, %v498_v6  ;;  %v2625_v11 = vpop.f32.mrb[19].mxu1 }
 0x613   :  { %v625_v13 = vpop.f32.mrb[20].mxu1 }
 0x614   :  { %v2640_v14 = vpop.f32.mrb[21].mxu1  ;;  %v626_v16 = vadd.f32 %v2421_v12, %v625_v13 }
 0x615   :  { %v628_v15 = vpop.f32.mrb[22].mxu1 }
 0x616   :  { %v629_v17 = vadd.f32 %v2421_v12, %v628_v15  ;;  %v2641_v18 = vpop.f32.mrb[23].mxu1 }
 0x618   :  { %v695_v19 = vpack.c.bf16 %v629_v17, %v626_v16 }
 0x61a   :  { %v700_v51 = vsel %vm105_vm0, %v695_v19, 0 }
 0x61b   :  { %2651 = vmatpush3.bf16.xpose.msra.mxu1 %v700_v51 }
 0x61c   :  { %2662 = vmatprep.subr.bf16.mxu1 %v2973_v30 }
 0x622   :  { %2653 = vmatmul.mubr.msk.bf16.vlgmr.msra.gmra.mrb[24].mxu1 %vm105_vm0, %v694_v7 }
 0x623   :  { %2664 = vmatprep.mubr.msk.bf16.mxu1 %vm2974_vm2, %v2973_v30  ;;  %2663 = vmatpush3.bf16.msra.mxu1 %v2851_v50 }
 0x624   :  { %2674 = vmatprep.subr.bf16.mxu1 %v2973_v30 }
 0x6f5   :  { %v736_v20 = vpop.f32.mrb[24].mxu1 }
 0x6f6   :  { %v743_v21 = vmul.f32 0.25, %v736_v20  ;;  %v2654_v22 = vpop.f32.mrb[25].mxu1 }
 0x6f7   :  { %v739_v23 = vpop.f32.mrb[26].mxu1 }
 0x6f8   :  { %v744_v24 = vmul.f32 0.25, %v739_v23  ;;  %v2655_v25 = vpop.f32.mrb[27].mxu1  ;;  %v745_v26 = vadd.f32 %v743_v21, %v3155_v35  ;;  %v2853_v21 = vld [vmem:[%s3535_s3 + $0xc0] sm:$0xff]  }
 0x6fa   :  { %v747_v27 = vsel %vm105_vm0, %v745_v26, -inf  ;;  %v746_v28 = vadd.f32 %v744_v24, %v3160_v39 }
 0x6fb   :  { %748 = vmax.xlane.f32.xlu0 %v747_v27 }
 0x6fc   :  { %v750_v1 = vsel %vm105_vm0, %v746_v28, -inf }
 0x6fd   :  { %751 = vmax.xlane.f32.xlu1 %v750_v1  ;;  %v2436_v1 = vld [vmem:[%s3536_s4 + $0x9] ss:$0 sm:$0xff] }
 0x788   :  { %v749_v3 = vpop.xlane.xlu0 %748 }
 0x789   :  { %v753_v7 = vsub.f32 %v745_v26, %v749_v3 }
 0x78a   :  { %v752_v29 = vpop.xlane.xlu1 %751 }
 0x78b   :  { %v755_v31 = vmul.f32 1.442695, %v753_v7  ;;  %v754_v32 = vsub.f32 %v746_v28, %v752_v29 }
 0x78d   :  { %2894 = vpow2.f32 %v755_v31  ;;  %v757_v33 = vmul.f32 1.442695, %v754_v32  ;;  %v2437_v32 = vld [vmem:[%s3536_s4 + $0xa] ss:$0 sm:$0xff] }
 0x78f   :  { %2896 = vpow2.f32 %v757_v33 }
 0x797   :  { %v2895_v34 = vpop.eup %2894 }
 0x798   :  { %v759_v36 = vsel %vm105_vm0, %v2895_v34, 0.0 }
 0x799   :  { %v2897_v37 = vpop.eup %2896  ;;  %760 = vadd.xlane.f32.xlu0 %v759_v36 }
 0x79a   :  { %v762_v38 = vsel %vm105_vm0, %v2897_v37, 0.0 }
 0x79b   :  { %763 = vadd.xlane.f32.xlu1 %v762_v38  ;;  %v2854_v38 = vld [vmem:[%s3535_s3 + $0xc8] sm:$0xff]  }
 0x826   :  { %v761_v40 = vpop.xlane.xlu0 %760 }
 0x827   :  { %2898 = vrcp.f32 %v761_v40  ;;  %v2855_v40 = vld [vmem:[%s3535_s3 + $0xd0] sm:$0xff]  }
 0x828   :  { %v764_v41 = vpop.xlane.xlu1 %763 }
 0x829   :  { %2900 = vrcp.f32 %v764_v41  ;;  %v2856_v41 = vld [vmem:[%s3535_s3 + $0xd8] sm:$0xff]  }
 0x831   :  { %v2899_v42 = vpop.eup %2898 }
 0x832   :  { %v767_v44 = vmul.f32 %v2899_v42, %v2895_v34  ;;  %v2857_v42 = vld [vmem:[%s3535_s3 + $0xe0] sm:$0xff]  }
 0x833   :  { %v2901_v43 = vpop.eup %2900 }
 0x834   :  { %v768_v45 = vmul.f32 %v2901_v43, %v2897_v37  ;;  %v2438_v43 = vld [vmem:[%s3536_s4 + $0xb] ss:$0 sm:$0xff] }
 0x836   :  { %v769_v49 = vpack.c.bf16 %v768_v45, %v767_v44 }
 0x838   :  { %2659 = vmatmul.mubr.msk.bf16.vlgmr.msra.gmra.mrb[12].mxu0 %vm105_vm0, %v769_v49 }
 0x839   :  { %2669 = vmatpush3.bf16.msra.mxu0 %v2850_v46  ;;  %2670 = vmatprep.mubr.msk.bf16.mxu0 %vm2974_vm2, %v2973_v30 }
 0x83a   :  { %2682 = vmatprep.subr.bf16.mxu0 %v2973_v30 }
 0x840   :  { %2671 = vmatmul.mubr.msk.bf16.vlgmr.msra.gmra.mrb[16].mxu0 %vm105_vm0, %v507_v10 }
 0x841   :  { %2690 = vmatprep.mubr.msk.bf16.mxu0 %vm2974_vm2, %v2973_v30  ;;  %2683 = vmatpush3.bf16.msra.mxu0 %v2854_v38 }
 0x842   :  { %2684 = vmatprep.subr.bf16.mxu0 %v2973_v30 }
 0x845   :  { %2685 = vmatpush3.bf16.msra.mxu0 %v2855_v40  ;;  %v2448_v40 = vld [vmem:[%s3536_s4 + $0xd] ss:$0 sm:$0xff] }
 0x846   :  { %2686 = vmatprep.subr.bf16.mxu0 %v2973_v30 }
 0x849   :  { %2687 = vmatpush3.bf16.msra.mxu0 %v2856_v41 }
 0x84a   :  { %2688 = vmatprep.subr.bf16.mxu0 %v2973_v30 }
 0x84d   :  { %2689 = vmatpush3.bf16.msra.mxu0 %v2857_v42 }
 0x84e   :  { %2710 = vmatprep.subr.bf16.mxu0 %v2973_v30 }
 0x90b   :  { %v808_v52 = vpop.f32.mrb[12].mxu0 }
 0x90c   :  { %v2660_v53 = vpop.f32.mrb[13].mxu0 }
 0x90d   :  { %v811_v54 = vpop.f32.mrb[14].mxu0 }
 0x90e   :  { %v817_v55 = vpack.c.bf16 %v811_v54, %v808_v52  ;;  %v2661_v56 = vpop.f32.mrb[15].mxu0 }
 0x910   :  { %2665 = vmatmul.mubr.msk.bf16.vlgmr.msra.gmra.mrb[28].mxu1 %vm105_vm0, %v817_v55 }
 0x911   :  { %2678 = vmatprep.mubr.msk.bf16.mxu1 %vm2974_vm2, %v2973_v30 }
 0x913   :  { %v911_v57 = vpop.f32.mrb[16].mxu0 }
 0x914   :  { %v2672_v58 = vpop.f32.mrb[17].mxu0 }
 0x915   :  { %v914_v59 = vpop.f32.mrb[18].mxu0 }
 0x916   :  { %v2673_v60 = vpop.f32.mrb[19].mxu0 }
 0x9e3   :  { %v861_v61 = vpop.f32.mrb[28].mxu1 }
 0x9e4   :  { %v912_v63 = vadd.f32 %v911_v57, %v861_v61  ;;  %v2666_v0 = vpop.f32.mrb[29].mxu1 }
 0x9e5   :  { %v864_v2 = vpop.f32.mrb[30].mxu1 }
 0x9e6   :  { %v923_v4 = vadd.f32 %v2435_v62, %v912_v63  ;;  %v915_v5 = vadd.f32 %v914_v59, %v864_v2  ;;  %v2667_v6 = vpop.f32.mrb[31].mxu1 }
 0x9e8   :  { %v924_v8 = vadd.f32 %v2435_v62, %v915_v5  ;;  %v925_v9 = vadd.f32 %v923_v4, %v3072_v47 }
 0x9ea   :  { %v929_v10 = vsel %vm152_vm1, %v925_v9, 0.0  ;;  %v926_v11 = vadd.f32 %v924_v8, %v3074_v48  ;;  %v2852_v48 = vld [vmem:[%s3535_s3 + $0xb8] sm:$0xff]  }
 0x9eb   :  { %930 = vadd.xlane.f32.xlu0 %v929_v10  ;;  %2675 = vmatpush3.bf16.msra.mxu1 %v2852_v48 }
 0x9ec   :  { %v932_v12 = vsel %vm152_vm1, %v926_v11, 0.0  ;;  %2676 = vmatprep.subr.bf16.mxu1 %v2973_v30 }
 0x9ed   :  { %933 = vadd.xlane.f32.xlu1 %v932_v12 }
 0x9ef   :  { %2677 = vmatpush3.bf16.msra.mxu1 %v2853_v21 }
 0x9f0   :  { %2694 = vmatprep.subr.bf16.mxu1 %v2973_v30 }
 0xa78   :  { %v931_v13 = vpop.xlane.xlu0 %930 }
 0xa79   :  { %v935_v14 = vmul.f32 0.03125, %v931_v13 }
 0xa7a   :  { %v934_v15 = vpop.xlane.xlu1 %933 }
 0xa7b   :  { %v937_v16 = vsub.f32 %v925_v9, %v935_v14  ;;  %v936_v17 = vmul.f32 0.03125, %v934_v15 }
 0xa7d   :  { %v938_v18 = vsub.f32 %v926_v11, %v936_v17  ;;  %v939_v19 = vmul.f32 %v937_v16, %v937_v16  ;;  %v2442_v11 = vld [vmem:[%s3536_s4 + $0xc] ss:$0 sm:$0xff] }
 0xa7f   :  { %v941_v51 = vsel %vm152_vm1, %v939_v19, 0.0  ;;  %v940_v20 = vmul.f32 %v938_v18, %v938_v18 }
 0xa80   :  { %942 = vadd.xlane.f32.xlu0 %v941_v51 }
 0xa81   :  { %v944_v47 = vsel %vm152_vm1, %v940_v20, 0.0 }
 0xa82   :  { %945 = vadd.xlane.f32.xlu1 %v944_v47 }
 0xb0d   :  { %v943_v22 = vpop.xlane.xlu0 %942 }
 0xb0e   :  { %v947_v23 = vmul.f32 0.03125, %v943_v22 }
 0xb0f   :  { %v946_v24 = vpop.xlane.xlu1 %945 }
 0xb10   :  { %v949_v25 = vadd.f32 1e-12, %v947_v23  ;;  %v948_v26 = vmul.f32 0.03125, %v946_v24 }
 0xb12   :  { %2902 = vrsqrt.f32 %v949_v25  ;;  %v950_v27 = vadd.f32 1e-12, %v948_v26 }
 0xb14   :  { %2904 = vrsqrt.f32 %v950_v27 }
 0xb1c   :  { %v2903_v28 = vpop.eup %2902 }
 0xb1d   :  { %v953_v3 = vmul.f32 %v2903_v28, %v937_v16 }
 0xb1e   :  { %v2905_v7 = vpop.eup %2904 }
 0xb1f   :  { %v959_v29 = vmul.f32 %v2436_v1, %v953_v3  ;;  %v954_v31 = vmul.f32 %v2905_v7, %v938_v18  ;;  %v2859_v3 = vld [vmem:[%s3535_s3 + $0x108] sm:$0xff]   ;;  %v2860_v7 = vld [vmem:[%s3535_s3 + $0xf0] sm:$0xff]  }
 0xb21   :  { %v960_v33 = vmul.f32 %v2436_v1, %v954_v31  ;;  %v965_v34 = vadd.f32 %v2437_v32, %v959_v29  ;;  %v2858_v1 = vld [vmem:[%s3535_s3 + $0xe8] sm:$0xff]   ;;  %v2861_v29 = vld [vmem:[%s3535_s3 + $0x110] sm:$0xff]  }
 0xb23   :  { %v966_v36 = vadd.f32 %v2437_v32, %v960_v33 }
 0xb25   :  { %v971_v37 = vpack.c.bf16 %v966_v36, %v965_v34 }
 0xb27   :  { %2679 = vmatmul.mubr.msk.bf16.vlgmr.msra.gmra.mrb[32].mxu1 %vm152_vm1, %v971_v37 }
 0xb28   :  { %2698 = vmatprep.mubr.msk.bf16.mxu1 %vm2974_vm2, %v2973_v30  ;;  %2695 = vmatpush3.bf16.msra.mxu1 %v2858_v1 }
 0xb29   :  { %2696 = vmatprep.subr.bf16.mxu1 %v2973_v30 }
 0xb2c   :  { %2697 = vmatpush3.bf16.msra.mxu1 %v2860_v7 }
 0xb2d   :  { %2702 = vmatprep.subr.bf16.mxu1 %v2973_v30 }
 0xbfa   :  { %v1026_v44 = vpop.f32.mrb[32].mxu1 }
 0xbfb   :  { %v1027_v45 = vadd.f32 %v2438_v43, %v1026_v44  ;;  %v2680_v46 = vpop.f32.mrb[33].mxu1 }
 0xbfc   :  { %v1029_v49 = vpop.f32.mrb[34].mxu1 }
 0xbfd   :  { %v1033_v50 = vmul.f32 %v1027_v45, %v1027_v45  ;;  %v1030_v52 = vadd.f32 %v2438_v43, %v1029_v49  ;;  %v2681_v53 = vpop.f32.mrb[35].mxu1 }
 0xbff   :  { %v1035_v54 = vmul.f32 %v1033_v50, %v1027_v45  ;;  %v1034_v55 = vmul.f32 %v1030_v52, %v1030_v52 }
 0xc01   :  { %v1037_v56 = vmul.f32 0.044715, %v1035_v54  ;;  %v1036_v57 = vmul.f32 %v1034_v55, %v1030_v52  ;;  %v2863_v54 = vld [vmem:[%s3535_s3 + $0x100] sm:$0xff]   ;;  %v2450_v55 = vld [vmem:[%s3536_s4 + $0xf] ss:$0 sm:$0xff] }
 0xc03   :  { %v1039_v58 = vadd.f32 %v1037_v56, %v1027_v45  ;;  %v1038_v59 = vmul.f32 0.044715, %v1036_v57  ;;  %v2458_v57 = vld [vmem:[%s3536_s4 + $0x11] ss:$0 sm:$0xff] }
 0xc05   :  { %v1041_v60 = vmul.f32 0.7978846, %v1039_v58  ;;  %v1040_v61 = vadd.f32 %v1038_v59, %v1030_v52 }
 0xc07   :  { %2906 = vtanh.f32 %v1041_v60  ;;  %v1042_v62 = vmul.f32 0.7978846, %v1040_v61 }
 0xc09   :  { %2908 = vtanh.f32 %v1042_v62 }
 0xc11   :  { %v2907_v63 = vpop.eup %2906 }
 0xc12   :  { %v1045_v0 = vadd.f32 1.0, %v2907_v63 }
 0xc13   :  { %v2909_v2 = vpop.eup %2908 }
 0xc14   :  { %v1047_v4 = vmul.f32 0.5, %v1045_v0  ;;  %v1046_v5 = vadd.f32 1.0, %v2909_v2 }
 0xc16   :  { %v1048_v6 = vmul.f32 0.5, %v1046_v5  ;;  %v1049_v8 = vmul.f32 %v1047_v4, %v1027_v45  ;;  %v2449_v45 = vld [vmem:[%s3536_s4 + $0xe] ss:$0 sm:$0xff] }
 0xc18   :  { %v1050_v9 = vmul.f32 %v1048_v6, %v1030_v52  ;;  %v2862_v52 = vld [vmem:[%s3535_s3 + $0xf8] sm:$0xff]  }
 0xc1a   :  { %v1059_v10 = vpack.c.bf16 %v1050_v9, %v1049_v8 }
 0xc1c   :  { %2691 = vmatmul.mubr.msk.bf16.vlgmr.msra.gmra.mrb[20].mxu0 %vm1089_vm3, %v1059_v10  ;;  %v2454_v10 = vld [vmem:[%s3536_s4 + $0x10] ss:$0 sm:$0xff] }
 0xc1d   :  { %2714 = vmatprep.mubr.msk.bf16.mxu0 %vm2974_vm2, %v2973_v30  ;;  %2711 = vmatpush3.bf16.msra.mxu0 %v2859_v3  ;;  %v2464_v3 = vld [vmem:[%s3536_s4 + $0x12] ss:$0 sm:$0xff] }
 0xc1e   :  { %2712 = vmatprep.subr.bf16.mxu0 %v2973_v30 }
 0xc21   :  { %2713 = vmatpush3.bf16.msra.mxu0 %v2861_v29 }
 0xc22   :  { %2724 = vmatprep.subr.bf16.mxu0 %v2973_v30 }
 0xcef   :  { %v1127_v12 = vpop.f32.mrb[20].mxu0 }
 0xcf0   :  { %v1128_v13 = vadd.f32 %v2442_v11, %v1127_v12  ;;  %v2692_v14 = vpop.f32.mrb[21].mxu0 }
 0xcf1   :  { %v1130_v15 = vpop.f32.mrb[22].mxu0 }
 0xcf2   :  { %v1131_v16 = vadd.f32 %v2442_v11, %v1130_v15  ;;  %v2693_v17 = vpop.f32.mrb[23].mxu0  ;;  %v1134_v18 = vadd.f32 %v1128_v13, %v965_v34 }
 0xcf4   :  { %v1138_v19 = vsel %vm152_vm1, %v1134_v18, 0.0  ;;  %v1135_v51 = vadd.f32 %v1131_v16, %v966_v36 }
 0xcf5   :  { %1139 = vadd.xlane.f32.xlu0 %v1138_v19  ;;  %v2864_v19 = vld [vmem:[%s3535_s3 + $0x120] sm:$0xff]  }
 0xcf6   :  { %v1141_v20 = vsel %vm152_vm1, %v1135_v51, 0.0 }
 0xcf7   :  { %1142 = vadd.xlane.f32.xlu1 %v1141_v20  ;;  %v2866_v20 = vld [vmem:[%s3535_s3 + $0x140] sm:$0xff]  }
 0xd82   :  { %v1140_v47 = vpop.xlane.xlu0 %1139 }
 0xd83   :  { %v1144_v48 = vmul.f32 0.03125, %v1140_v47  ;;  %v2867_v47 = vld [vmem:[%s3535_s3 + $0x148] sm:$0xff]  }
 0xd84   :  { %v1143_v21 = vpop.xlane.xlu1 %1142 }
 0xd85   :  { %v1146_v22 = vsub.f32 %v1134_v18, %v1144_v48  ;;  %v1145_v23 = vmul.f32 0.03125, %v1143_v21 }
 0xd87   :  { %v1147_v24 = vsub.f32 %v1135_v51, %v1145_v23  ;;  %v1148_v25 = vmul.f32 %v1146_v22, %v1146_v22  ;;  %v2865_v51 = vld [vmem:[%s3535_s3 + $0x128] sm:$0xff]  }
 0xd89   :  { %v1150_v26 = vsel %vm152_vm1, %v1148_v25, 0.0  ;;  %v1149_v27 = vmul.f32 %v1147_v24, %v1147_v24 }
 0xd8a   :  { %1151 = vadd.xlane.f32.xlu0 %v1150_v26 }
 0xd8b   :  { %v1153_v28 = vsel %vm152_vm1, %v1149_v27, 0.0 }
 0xd8c   :  { %1154 = vadd.xlane.f32.xlu1 %v1153_v28 }
 0xe17   :  { %v1152_v31 = vpop.xlane.xlu0 %1151 }
 0xe18   :  { %v1156_v32 = vmul.f32 0.03125, %v1152_v31 }
 0xe19   :  { %v1155_v33 = vpop.xlane.xlu1 %1154 }
 0xe1a   :  { %v1158_v34 = vadd.f32 1e-12, %v1156_v32  ;;  %v1157_v36 = vmul.f32 0.03125, %v1155_v33 }
 0xe1c   :  { %2910 = vrsqrt.f32 %v1158_v34  ;;  %v1159_v37 = vadd.f32 1e-12, %v1157_v36 }
 0xe1e   :  { %2912 = vrsqrt.f32 %v1159_v37  ;;  %v2472_v37 = vld [vmem:[%s3536_s4 + $0x14] ss:$0 sm:$0xff] }
 0xe26   :  { %v2911_v38 = vpop.eup %2910 }
 0xe27   :  { %v1162_v41 = vmul.f32 %v2911_v38, %v1146_v22 }
 0xe28   :  { %v2913_v42 = vpop.eup %2912 }
 0xe29   :  { %v1168_v43 = vmul.f32 %v2448_v40, %v1162_v41  ;;  %v1163_v44 = vmul.f32 %v2913_v42, %v1147_v24 }
 0xe2b   :  { %v1169_v46 = vmul.f32 %v2448_v40, %v1163_v44  ;;  %v3294_v49 = vadd.f32 %v2449_v45, %v1168_v43 }
 0xe2d   :  { %v3296_v50 = vadd.f32 %v2449_v45, %v1169_v46 }
 0xe2f   :  { %v3303_v53 = vpack.c.bf16 %v3296_v50, %v3294_v49 }
 0xe31   :  { %2699 = vmatmul.mubr.msk.bf16.vlgmr.msra.gmra.mrb[36].mxu1 %vm152_vm1, %v3303_v53  ;;  %2715 = vmatmul.mubr.msk.bf16.vlgmr.msra.gmra.mrb[24].mxu0 %vm152_vm1, %v3303_v53 }
 0xe32   :  { %2703 = vmatpush3.bf16.msra.mxu1 %v2862_v52  ;;  %2706 = vmatprep.mubr.msk.bf16.mxu1 %vm2974_vm2, %v2973_v30 }
 0xe33   :  { %2704 = vmatprep.subr.bf16.mxu1 %v2973_v30  ;;  %2726 = vmatprep.mubr.msk.bf16.mxu0 %vm2974_vm2, %v2973_v30 }
 0xe36   :  { %2705 = vmatpush3.bf16.msra.mxu1 %v2863_v54 }
 0xe37   :  { %2718 = vmatprep.subr.bf16.mxu1 %v2973_v30 }
 0xe39   :  { %2707 = vmatmul.mubr.msk.bf16.vlgmr.msra.gmra.mrb[40].mxu1 %vm152_vm1, %v3303_v53 }
 0xe3a   :  { %2720 = vmatprep.mubr.msk.bf16.mxu1 %vm2974_vm2, %v2973_v30 }
 0xf04   :  { %v1235_v56 = vpop.f32.mrb[36].mxu1  ;;  %v1359_v58 = vpop.f32.mrb[24].mxu0 }
 0xf05   :  { %v2700_v59 = vpop.f32.mrb[37].mxu1  ;;  %v2716_v60 = vpop.f32.mrb[25].mxu0  ;;  %v1236_v63 = vadd.f32 %v2450_v55, %v1235_v56  ;;  %v1360_v0 = vadd.f32 %v2458_v57, %v1359_v58 }
 0xf06   :  { %v1238_v61 = vpop.f32.mrb[38].mxu1  ;;  %v1362_v62 = vpop.f32.mrb[26].mxu0 }
 0xf07   :  { %v1239_v2 = vadd.f32 %v2450_v55, %v1238_v61  ;;  %v1363_v4 = vadd.f32 %v2458_v57, %v1362_v62  ;;  %v2701_v5 = vpop.f32.mrb[39].mxu1  ;;  %v2717_v6 = vpop.f32.mrb[27].mxu0 }
 0xf08   :  { %v2868_v6 = vld [vmem:[%s3535_s3 + $0x130] sm:$0xff]  }
 0xf09   :  { %v1366_v8 = vpack.c.bf16 %v1239_v2, %v1236_v63  ;;  %v1442_v9 = vpack.c.bf16 %v1363_v4, %v1360_v0 }
 0xf0b   :  { %2725 = vmatpush3.bf16.msra.mxu0 %v1442_v9  ;;  %v2869_v9 = vld [vmem:[%s3535_s3 + $0x138] sm:$0xff]  }
 0xf0c   :  { %v1297_v11 = vpop.f32.mrb[40].mxu1  ;;  %2738 = vmatprep.subr.bf16.mxu0 %v2973_v30 }
 0xf0d   :  { %v2708_v12 = vpop.f32.mrb[41].mxu1  ;;  %v1298_v14 = vadd.f32 %v2454_v10, %v1297_v11 }
 0xf0e   :  { %v1300_v13 = vpop.f32.mrb[42].mxu1 }
 0xf0f   :  { %v1301_v15 = vadd.f32 %v2454_v10, %v1300_v13  ;;  %v2709_v16 = vpop.f32.mrb[43].mxu1 }
 0xf11   :  { %v1367_v17 = vpack.c.bf16 %v1301_v15, %v1298_v14  ;;  %v2468_v15 = vld [vmem:[%s3536_s4 + $0x13] ss:$0 sm:$0xff] }
 0xf13   :  { %v1372_v18 = vsel %vm105_vm0, %v1367_v17, 0 }
 0xf14   :  { %2719 = vmatpush3.bf16.xpose.msra.mxu1 %v1372_v18 }
 0xf15   :  { %2730 = vmatprep.subr.bf16.mxu1 %v2973_v30 }
 0xf1b   :  { %2721 = vmatmul.mubr.msk.bf16.vlgmr.msra.gmra.mrb[44].mxu1 %vm105_vm0, %v1366_v8 }
 0xf1c   :  { %2731 = vmatpush3.bf16.msra.mxu1 %v2864_v19  ;;  %2734 = vmatprep.mubr.msk.bf16.mxu1 %vm2974_vm2, %v2973_v30 }
 0xf1d   :  { %2732 = vmatprep.subr.bf16.mxu1 %v2973_v30 }
 0xf20   :  { %2733 = vmatpush3.bf16.msra.mxu1 %v2865_v51 }
 0xf21   :  { %2746 = vmatprep.subr.bf16.mxu1 %v2973_v30 }
 0xf23   :  { %2735 = vmatmul.mubr.msk.bf16.vlgmr.msra.gmra.mrb[48].mxu1 %vm152_vm1, %v3303_v53 }
 0xf24   :  { %2747 = vmatpush3.bf16.msra.mxu1 %v2866_v20  ;;  %2750 = vmatprep.mubr.msk.bf16.mxu1 %vm2974_vm2, %v2973_v30 }
 0xf25   :  { %2748 = vmatprep.subr.bf16.mxu1 %v2973_v30 }
 0xf28   :  { %2749 = vmatpush3.bf16.msra.mxu1 %v2867_v47 }
 0xf29   :  { %2760 = vmatprep.subr.bf16.mxu1 %v2973_v30 }
 0xf2b   :  { %2751 = vmatmul.mubr.msk.bf16.vlgmr.msra.gmra.mrb[52].mxu1 %vm152_vm1, %v3303_v53 }
 0xf2c   :  { %2762 = vmatprep.mubr.msk.bf16.mxu1 %vm2974_vm2, %v2973_v30 }
 0xfee   :  { %v1408_v48 = vpop.f32.mrb[44].mxu1 }
 0xfef   :  { %v1415_v21 = vmul.f32 0.25, %v1408_v48  ;;  %v2722_v22 = vpop.f32.mrb[45].mxu1 }
 0xff0   :  { %v1411_v23 = vpop.f32.mrb[46].mxu1 }
 0xff1   :  { %v1416_v24 = vmul.f32 0.25, %v1411_v23  ;;  %v2723_v25 = vpop.f32.mrb[47].mxu1  ;;  %v1417_v26 = vadd.f32 %v1415_v21, %v3155_v35 }
 0xff3   :  { %v1419_v27 = vsel %vm105_vm0, %v1417_v26, -inf  ;;  %v1418_v28 = vadd.f32 %v1416_v24, %v3160_v39 }
 0xff4   :  { %1420 = vmax.xlane.f32.xlu0 %v1419_v27 }
 0xff5   :  { %v1422_v1 = vsel %vm105_vm0, %v1418_v28, -inf }
 0xff6   :  { %1423 = vmax.xlane.f32.xlu1 %v1422_v1  ;;  %v1545_v7 = vpop.f32.mrb[48].mxu1 }
 0xff7   :  { %v2736_v29 = vpop.f32.mrb[49].mxu1  ;;  %v3368_v32 = vadd.f32 %v2464_v3, %v1545_v7 }
 0xff8   :  { %v1548_v31 = vpop.f32.mrb[50].mxu1 }
 0xff9   :  { %v3370_v33 = vadd.f32 %v2464_v3, %v1548_v31  ;;  %v2737_v34 = vpop.f32.mrb[51].mxu1 }
 0xffb   :  { %v1676_v36 = vpack.c.bf16 %v3370_v33, %v3368_v32 }
 0xffe   :  { %v1669_v38 = vpop.f32.mrb[52].mxu1 }
 0xfff   :  { %v2752_v40 = vpop.f32.mrb[53].mxu1  ;;  %v1670_v42 = vadd.f32 %v2472_v37, %v1669_v38 }
0x1000   :  { %v1672_v41 = vpop.f32.mrb[54].mxu1 }
0x1001   :  { %v1673_v43 = vadd.f32 %v2472_v37, %v1672_v41  ;;  %v2753_v44 = vpop.f32.mrb[55].mxu1 }
0x1002   :  { %v2870_v44 = vld [vmem:[%s3535_s3 + $0x118] sm:$0xff]  }
0x1003   :  { %v1752_v45 = vpack.c.bf16 %v1673_v43, %v1670_v42 }
0x1005   :  { %2761 = vmatpush3.bf16.msra.mxu1 %v1752_v45 }
0x1006   :  { %2772 = vmatprep.subr.bf16.mxu1 %v2973_v30 }
0x1081   :  { %v1421_v46 = vpop.xlane.xlu0 %1420 }
0x1082   :  { %v1425_v52 = vsub.f32 %v1417_v26, %v1421_v46  ;;  %v2871_v46 = vld [vmem:[%s3535_s3 + $0x150] sm:$0xff]  }
0x1083   :  { %v1424_v54 = vpop.xlane.xlu1 %1423 }
0x1084   :  { %v1427_v55 = vmul.f32 1.442695, %v1425_v52  ;;  %v1426_v56 = vsub.f32 %v1418_v28, %v1424_v54 }
0x1086   :  { %2914 = vpow2.f32 %v1427_v55  ;;  %v1429_v57 = vmul.f32 1.442695, %v1426_v56 }
0x1088   :  { %2916 = vpow2.f32 %v1429_v57 }
0x1090   :  { %v2915_v58 = vpop.eup %2914 }
0x1091   :  { %v1431_v59 = vsel %vm105_vm0, %v2915_v58, 0.0 }
0x1092   :  { %v2917_v60 = vpop.eup %2916  ;;  %1432 = vadd.xlane.f32.xlu0 %v1431_v59 }
0x1093   :  { %v1434_v61 = vsel %vm105_vm0, %v2917_v60, 0.0 }
0x1094   :  { %1435 = vadd.xlane.f32.xlu1 %v1434_v61 }
0x111f   :  { %v1433_v62 = vpop.xlane.xlu0 %1432 }
0x1120   :  { %2918 = vrcp.f32 %v1433_v62 }
0x1121   :  { %v1436_v63 = vpop.xlane.xlu1 %1435 }
0x1122   :  { %2920 = vrcp.f32 %v1436_v63  ;;  %v2482_v63 = vld [vmem:[%s3536_s4 + $0x15] ss:$0 sm:$0xff] }
0x112a   :  { %v2919_v0 = vpop.eup %2918 }
0x112b   :  { %v1439_v4 = vmul.f32 %v2919_v0, %v2915_v58 }
0x112c   :  { %v2921_v2 = vpop.eup %2920 }
0x112d   :  { %v1440_v5 = vmul.f32 %v2921_v2, %v2917_v60 }
0x112f   :  { %v1441_v8 = vpack.c.bf16 %v1440_v5, %v1439_v4 }
0x1131   :  { %2727 = vmatmul.mubr.msk.bf16.vlgmr.msra.gmra.mrb[28].mxu0 %vm105_vm0, %v1441_v8 }
0x1132   :  { %2739 = vmatpush3.bf16.msra.mxu0 %v2868_v6  ;;  %2742 = vmatprep.mubr.msk.bf16.mxu0 %vm2974_vm2, %v2973_v30 }
0x1133   :  { %2740 = vmatprep.subr.bf16.mxu0 %v2973_v30 }
0x1136   :  { %2741 = vmatpush3.bf16.msra.mxu0 %v2869_v9 }
0x1137   :  { %2754 = vmatprep.subr.bf16.mxu0 %v2973_v30 }
0x1139   :  { %2743 = vmatmul.mubr.msk.bf16.vlgmr.msra.gmra.mrb[32].mxu0 %vm152_vm1, %v3303_v53 }
0x113a   :  { %2756 = vmatprep.mubr.msk.bf16.mxu0 %vm2974_vm2, %v2973_v30 }
0x1204   :  { %v1480_v10 = vpop.f32.mrb[28].mxu0 }
0x1205   :  { %v2728_v11 = vpop.f32.mrb[29].mxu0 }
0x1206   :  { %v1483_v12 = vpop.f32.mrb[30].mxu0 }
0x1207   :  { %v1489_v13 = vpack.c.bf16 %v1483_v12, %v1480_v10  ;;  %v2729_v14 = vpop.f32.mrb[31].mxu0 }
0x120c   :  { %v1607_v16 = vpop.f32.mrb[32].mxu0 }
0x120d   :  { %v2744_v17 = vpop.f32.mrb[33].mxu0  ;;  %v1608_v19 = vadd.f32 %v2468_v15, %v1607_v16 }
0x120e   :  { %v1610_v18 = vpop.f32.mrb[34].mxu0 }
0x120f   :  { %v1611_v51 = vadd.f32 %v2468_v15, %v1610_v18  ;;  %v2745_v20 = vpop.f32.mrb[35].mxu0 }
0x1211   :  { %v1677_v47 = vpack.c.bf16 %v1611_v51, %v1608_v19 }
0x1213   :  { %v1682_v53 = vsel %vm105_vm0, %v1677_v47, 0 }
0x1214   :  { %2755 = vmatpush3.bf16.xpose.msra.mxu0 %v1682_v53  ;;  %v2873_v53 = vld [vmem:[%s3535_s3 + $0x160] sm:$0xff]  }
0x1215   :  { %2766 = vmatprep.subr.bf16.mxu0 %v2973_v30 }
0x121b   :  { %2757 = vmatmul.mubr.msk.bf16.vlgmr.msra.gmra.mrb[36].mxu0 %vm105_vm0, %v1676_v36 }
0x121c   :  { %2768 = vmatprep.mubr.msk.bf16.mxu0 %vm2974_vm2, %v2973_v30  ;;  %2767 = vmatpush3.bf16.msra.mxu0 %v2871_v46 }
0x121d   :  { %2778 = vmatprep.subr.bf16.mxu0 %v2973_v30 }
0x12ee   :  { %v1718_v48 = vpop.f32.mrb[36].mxu0 }
0x12ef   :  { %v1725_v21 = vmul.f32 0.25, %v1718_v48  ;;  %v2758_v22 = vpop.f32.mrb[37].mxu0 }
0x12f0   :  { %v1721_v23 = vpop.f32.mrb[38].mxu0 }
0x12f1   :  { %v1726_v24 = vmul.f32 0.25, %v1721_v23  ;;  %v2759_v25 = vpop.f32.mrb[39].mxu0  ;;  %v1727_v26 = vadd.f32 %v1725_v21, %v3155_v35 }
0x12f3   :  { %v1729_v27 = vsel %vm105_vm0, %v1727_v26, -inf  ;;  %v1728_v28 = vadd.f32 %v1726_v24, %v3160_v39 }
0x12f4   :  { %1730 = vmax.xlane.f32.xlu0 %v1729_v27  ;;  %v2483_v27 = vld [vmem:[%s3536_s4 + $0x16] ss:$0 sm:$0xff] }
0x12f5   :  { %v1732_v1 = vsel %vm105_vm0, %v1728_v28, -inf }
0x12f6   :  { %1733 = vmax.xlane.f32.xlu1 %v1732_v1 }
0x1381   :  { %v1731_v3 = vpop.xlane.xlu0 %1730 }
0x1382   :  { %v1735_v7 = vsub.f32 %v1727_v26, %v1731_v3 }
0x1383   :  { %v1734_v29 = vpop.xlane.xlu1 %1733 }
0x1384   :  { %v1737_v31 = vmul.f32 1.442695, %v1735_v7  ;;  %v1736_v32 = vsub.f32 %v1728_v28, %v1734_v29  ;;  %v2484_v29 = vld [vmem:[%s3536_s4 + $0x17] ss:$0 sm:$0xff] }
0x1386   :  { %2922 = vpow2.f32 %v1737_v31  ;;  %v1739_v33 = vmul.f32 1.442695, %v1736_v32 }
0x1388   :  { %2924 = vpow2.f32 %v1739_v33 }
0x1390   :  { %v2923_v34 = vpop.eup %2922 }
0x1391   :  { %v1741_v36 = vsel %vm105_vm0, %v2923_v34, 0.0 }
0x1392   :  { %v2925_v35 = vpop.eup %2924  ;;  %1742 = vadd.xlane.f32.xlu0 %v1741_v36  ;;  %v2874_v36 = vld [vmem:[%s3535_s3 + $0x168] sm:$0xff]  }
0x1393   :  { %v1744_v37 = vsel %vm105_vm0, %v2925_v35, 0.0 }
0x1394   :  { %1745 = vadd.xlane.f32.xlu1 %v1744_v37  ;;  %v2876_v37 = vld [vmem:[%s3535_s3 + $0x178] sm:$0xff]  }
0x141f   :  { %v1743_v39 = vpop.xlane.xlu0 %1742 }
0x1420   :  { %2926 = vrcp.f32 %v1743_v39  ;;  %v2877_v39 = vld [vmem:[%s3535_s3 + $0x180] sm:$0xff]  }
0x1421   :  { %v1746_v38 = vpop.xlane.xlu1 %1745 }
0x1422   :  { %2928 = vrcp.f32 %v1746_v38  ;;  %v2485_v38 = vld [vmem:[%s3536_s4 + $0x18] ss:$0 sm:$0xff] }
0x142a   :  { %v2927_v40 = vpop.eup %2926 }
0x142b   :  { %v1749_v42 = vmul.f32 %v2927_v40, %v2923_v34 }
0x142c   :  { %v2929_v41 = vpop.eup %2928 }
0x142d   :  { %v1750_v43 = vmul.f32 %v2929_v41, %v2925_v35  ;;  %v2875_v35 = vld [vmem:[%s3535_s3 + $0x170] sm:$0xff]  }
0x142f   :  { %v1751_v45 = vpack.c.bf16 %v1750_v43, %v1749_v42 }
0x1431   :  { %2763 = vmatmul.mubr.msk.bf16.vlgmr.msra.gmra.mrb[56].mxu1 %vm105_vm0, %v1751_v45 }
0x1432   :  { %2773 = vmatpush3.bf16.msra.mxu1 %v2870_v44  ;;  %2774 = vmatprep.mubr.msk.bf16.mxu1 %vm2974_vm2, %v2973_v30 }
0x1433   :  { %2786 = vmatprep.subr.bf16.mxu1 %v2973_v30 }
0x1439   :  { %2775 = vmatmul.mubr.msk.bf16.vlgmr.msra.gmra.mrb[60].mxu1 %vm105_vm0, %v1489_v13 }
0x143a   :  { %2794 = vmatprep.mubr.msk.bf16.mxu1 %vm2974_vm2, %v2973_v30  ;;  %2787 = vmatpush3.bf16.msra.mxu1 %v2874_v36 }
0x143b   :  { %2788 = vmatprep.subr.bf16.mxu1 %v2973_v30 }
0x143e   :  { %2789 = vmatpush3.bf16.msra.mxu1 %v2875_v35 }
0x143f   :  { %2790 = vmatprep.subr.bf16.mxu1 %v2973_v30 }
0x1442   :  { %2791 = vmatpush3.bf16.msra.mxu1 %v2876_v37 }
0x1443   :  { %2792 = vmatprep.subr.bf16.mxu1 %v2973_v30 }
0x1446   :  { %2793 = vmatpush3.bf16.msra.mxu1 %v2877_v39 }
0x1447   :  { %2812 = vmatprep.subr.bf16.mxu1 %v2973_v30 }
0x1504   :  { %v1790_v52 = vpop.f32.mrb[56].mxu1 }
0x1505   :  { %v2764_v54 = vpop.f32.mrb[57].mxu1 }
0x1506   :  { %v1793_v55 = vpop.f32.mrb[58].mxu1 }
0x1507   :  { %v1799_v56 = vpack.c.bf16 %v1793_v55, %v1790_v52  ;;  %v2765_v57 = vpop.f32.mrb[59].mxu1 }
0x1509   :  { %2769 = vmatmul.mubr.msk.bf16.vlgmr.msra.gmra.mrb[40].mxu0 %vm105_vm0, %v1799_v56 }
0x150a   :  { %2782 = vmatprep.mubr.msk.bf16.mxu0 %vm2974_vm2, %v2973_v30 }
0x150c   :  { %v1893_v58 = vpop.f32.mrb[60].mxu1 }
0x150d   :  { %v2776_v59 = vpop.f32.mrb[61].mxu1 }
0x150e   :  { %v1896_v60 = vpop.f32.mrb[62].mxu1 }
0x150f   :  { %v2777_v61 = vpop.f32.mrb[63].mxu1 }
0x15dc   :  { %v1843_v62 = vpop.f32.mrb[40].mxu0 }
0x15dd   :  { %v1894_v0 = vadd.f32 %v1893_v58, %v1843_v62  ;;  %v2770_v2 = vpop.f32.mrb[41].mxu0 }
0x15de   :  { %v1846_v4 = vpop.f32.mrb[42].mxu0 }
0x15df   :  { %v1905_v5 = vadd.f32 %v2482_v63, %v1894_v0  ;;  %v1897_v6 = vadd.f32 %v1896_v60, %v1846_v4  ;;  %v2771_v8 = vpop.f32.mrb[43].mxu0 }
0x15e1   :  { %v1906_v9 = vadd.f32 %v2482_v63, %v1897_v6  ;;  %v1907_v10 = vadd.f32 %v1905_v5, %v3294_v49 }
0x15e3   :  { %v1911_v11 = vsel %vm152_vm1, %v1907_v10, 0.0  ;;  %v1908_v12 = vadd.f32 %v1906_v9, %v3296_v50  ;;  %v2872_v50 = vld [vmem:[%s3535_s3 + $0x158] sm:$0xff]  }
0x15e4   :  { %1912 = vadd.xlane.f32.xlu0 %v1911_v11  ;;  %2779 = vmatpush3.bf16.msra.mxu0 %v2872_v50 }
0x15e5   :  { %v1914_v13 = vsel %vm152_vm1, %v1908_v12, 0.0  ;;  %2780 = vmatprep.subr.bf16.mxu0 %v2973_v30 }
0x15e6   :  { %1915 = vadd.xlane.f32.xlu1 %v1914_v13 }
0x15e8   :  { %2781 = vmatpush3.bf16.msra.mxu0 %v2873_v53 }
0x15e9   :  { %2798 = vmatprep.subr.bf16.mxu0 %v2973_v30 }
0x1671   :  { %v1913_v14 = vpop.xlane.xlu0 %1912 }
0x1672   :  { %v1917_v15 = vmul.f32 0.03125, %v1913_v14 }
0x1673   :  { %v1916_v16 = vpop.xlane.xlu1 %1915 }
0x1674   :  { %v1919_v17 = vsub.f32 %v1907_v10, %v1917_v15  ;;  %v1918_v18 = vmul.f32 0.03125, %v1916_v16  ;;  %v2489_v10 = vld [vmem:[%s3536_s4 + $0x19] ss:$0 sm:$0xff] }
0x1676   :  { %v1920_v19 = vsub.f32 %v1908_v12, %v1918_v18  ;;  %v1921_v51 = vmul.f32 %v1919_v17, %v1919_v17 }
0x1678   :  { %v1923_v20 = vsel %vm152_vm1, %v1921_v51, 0.0  ;;  %v1922_v47 = vmul.f32 %v1920_v19, %v1920_v19 }
0x1679   :  { %1924 = vadd.xlane.f32.xlu0 %v1923_v20 }
0x167a   :  { %v1926_v49 = vsel %vm152_vm1, %v1922_v47, 0.0 }
0x167b   :  { %1927 = vadd.xlane.f32.xlu1 %v1926_v49 }
0x1706   :  { %v1925_v48 = vpop.xlane.xlu0 %1924 }
0x1707   :  { %v1929_v21 = vmul.f32 0.03125, %v1925_v48 }
0x1708   :  { %v1928_v22 = vpop.xlane.xlu1 %1927 }
0x1709   :  { %v1931_v23 = vadd.f32 1e-12, %v1929_v21  ;;  %v1930_v24 = vmul.f32 0.03125, %v1928_v22 }
0x170b   :  { %2930 = vrsqrt.f32 %v1931_v23  ;;  %v1932_v25 = vadd.f32 1e-12, %v1930_v24 }
0x170d   :  { %2932 = vrsqrt.f32 %v1932_v25 }
0x1715   :  { %v2931_v26 = vpop.eup %2930 }
0x1716   :  { %v1935_v28 = vmul.f32 %v2931_v26, %v1919_v17 }
0x1717   :  { %v2933_v1 = vpop.eup %2932 }
0x1718   :  { %v1941_v3 = vmul.f32 %v2483_v27, %v1935_v28  ;;  %v1936_v7 = vmul.f32 %v2933_v1, %v1920_v19 }
0x171a   :  { %v1942_v31 = vmul.f32 %v2483_v27, %v1936_v7  ;;  %v1947_v32 = vadd.f32 %v2484_v29, %v1941_v3  ;;  %v2157_v7 = vlaneseq }
0x171c   :  { %v1948_v33 = vadd.f32 %v2484_v29, %v1942_v31  ;;  %v2160_v29 = vshrl.u32 %v2157_v7, 7 }
0x171e   :  { %v1953_v34 = vpack.c.bf16 %v1948_v33, %v1947_v32 }
0x1720   :  { %2783 = vmatmul.mubr.msk.bf16.vlgmr.msra.gmra.mrb[44].mxu0 %vm152_vm1, %v1953_v34  ;;  %v2161_v34 = vmul.u32 8, %v2160_v29 }
0x1721   :  { %2800 = vmatprep.mubr.msk.bf16.mxu0 %vm2974_vm2, %v2973_v30 }
0x17f3   :  { %v2008_v40 = vpop.f32.mrb[44].mxu0 }
0x17f4   :  { %v2009_v41 = vadd.f32 %v2485_v38, %v2008_v40  ;;  %v2784_v42 = vpop.f32.mrb[45].mxu0 }
0x17f5   :  { %v2011_v43 = vpop.f32.mrb[46].mxu0 }
0x17f6   :  { %v2015_v44 = vmul.f32 %v2009_v41, %v2009_v41  ;;  %v2012_v45 = vadd.f32 %v2485_v38, %v2011_v43  ;;  %v2785_v46 = vpop.f32.mrb[47].mxu0  ;;  %v2496_v38 = vld [vmem:[%s3536_s4 + $0x1b] ss:$0 sm:$0xff] }
0x17f7   :  { %v2878_v46 = vld [vmem:[%s3535_s3 + $0x188] sm:$0xff]  }
0x17f8   :  { %v2017_v52 = vmul.f32 %v2015_v44, %v2009_v41  ;;  %v2016_v54 = vmul.f32 %v2012_v45, %v2012_v45 }
0x17fa   :  { %v2019_v55 = vmul.f32 0.044715, %v2017_v52  ;;  %v2018_v56 = vmul.f32 %v2016_v54, %v2012_v45  ;;  %v2879_v52 = vld [vmem:[%s3535_s3 + $0x190] sm:$0xff]  }
0x17fc   :  { %v2021_v57 = vadd.f32 %v2019_v55, %v2009_v41  ;;  %v2020_v58 = vmul.f32 0.044715, %v2018_v56 }
0x17fe   :  { %v2023_v59 = vmul.f32 0.7978846, %v2021_v57  ;;  %v2022_v60 = vadd.f32 %v2020_v58, %v2012_v45 }
0x1800   :  { %2934 = vtanh.f32 %v2023_v59  ;;  %v2024_v61 = vmul.f32 0.7978846, %v2022_v60  ;;  %v2880_v59 = vld [vmem:[%s3535_s3 + $0x198] sm:$0xff]   ;;  %v2881_v60 = vld [vmem:[%s3535_s3 + $0x1a0] sm:$0xff]  }
0x1802   :  { %2936 = vtanh.f32 %v2024_v61  ;;  %v2498_v61 = vld [vmem:[%s3536_s4 + $0x1c] ss:$0 sm:$0xff] }
0x180a   :  { %v2935_v62 = vpop.eup %2934 }
0x180b   :  { %v2027_v63 = vadd.f32 1.0, %v2935_v62 }
0x180c   :  { %v2937_v0 = vpop.eup %2936 }
0x180d   :  { %v2029_v2 = vmul.f32 0.5, %v2027_v63  ;;  %v2028_v4 = vadd.f32 1.0, %v2937_v0 }
0x180f   :  { %v2030_v5 = vmul.f32 0.5, %v2028_v4  ;;  %v2031_v6 = vmul.f32 %v2029_v2, %v2009_v41 }
0x1811   :  { %v2032_v8 = vmul.f32 %v2030_v5, %v2012_v45 }
0x1813   :  { %v2041_v9 = vpack.c.bf16 %v2032_v8, %v2031_v6 }
0x1815   :  { %2795 = vmatmul.mubr.msk.bf16.vlgmr.msra.gmra.mrb[64].mxu1 %vm1089_vm3, %v2041_v9  ;;  %v2353_v9 = vld [vmem:[%s3534_s2] sm:$0x3]  ;;  %s2975_s2 = smov [#allocation2]  }
0x1816   :  { %2816 = vmatprep.mubr.msk.bf16.mxu1 %vm2974_vm2, %v2973_v30  ;;  %2813 = vmatpush3.bf16.msra.mxu1 %v2880_v59 }
0x1817   :  { %2814 = vmatprep.subr.bf16.mxu1 %v2973_v30 }
0x181a   :  { %2815 = vmatpush3.bf16.msra.mxu1 %v2881_v60 }
0x18e8   :  { %v2108_v11 = vpop.f32.mrb[64].mxu1 }
0x18e9   :  { %v2109_v12 = vadd.f32 %v2489_v10, %v2108_v11  ;;  %v2796_v13 = vpop.f32.mrb[65].mxu1 }
0x18ea   :  { %v2111_v14 = vpop.f32.mrb[66].mxu1 }
0x18eb   :  { %v2112_v15 = vadd.f32 %v2489_v10, %v2111_v14  ;;  %v2797_v16 = vpop.f32.mrb[67].mxu1  ;;  %v2115_v17 = vadd.f32 %v2109_v12, %v1947_v32  ;;  %v2495_v32 = vld [vmem:[%s3536_s4 + $0x1a] ss:$0 sm:$0xff] }
0x18ed   :  { %v2119_v18 = vsel %vm152_vm1, %v2115_v17, 0.0  ;;  %v2116_v19 = vadd.f32 %v2112_v15, %v1948_v33  ;;  %v2158_v33 = vand.u32 127, %v2157_v7 }
0x18ee   :  { %2120 = vadd.xlane.f32.xlu0 %v2119_v18 }
0x18ef   :  { %v2122_v51 = vsel %vm152_vm1, %v2116_v19, 0.0  ;;  %vm2162_vm4 = vcmp.eq.s32.totalorder %v2158_v33, %v2161_v34 }
0x18f0   :  { %2123 = vadd.xlane.f32.xlu1 %v2122_v51  ;;  %v2163_v43 = vsel %vm2162_vm4, 1.0, %v2973_v30 }
0x18f1   :  { %v2164_v45 = vpack.c.bf16 %v2163_v43, %v2163_v43 }
0x197b   :  { %v2121_v20 = vpop.xlane.xlu0 %2120 }
0x197c   :  { %v2125_v47 = vmul.f32 0.03125, %v2121_v20 }
0x197d   :  { %v2124_v49 = vpop.xlane.xlu1 %2123 }
0x197e   :  { %v2127_v50 = vsub.f32 %v2115_v17, %v2125_v47  ;;  %v2126_v53 = vmul.f32 0.03125, %v2124_v49 }
0x1980   :  { %v2128_v48 = vsub.f32 %v2116_v19, %v2126_v53  ;;  %v2129_v21 = vmul.f32 %v2127_v50, %v2127_v50 }
0x1982   :  { %v2131_v22 = vsel %vm152_vm1, %v2129_v21, 0.0  ;;  %v2130_v23 = vmul.f32 %v2128_v48, %v2128_v48 }
0x1983   :  { %2132 = vadd.xlane.f32.xlu0 %v2131_v22 }
0x1984   :  { %v2134_v24 = vsel %vm152_vm1, %v2130_v23, 0.0 }
0x1985   :  { %2135 = vadd.xlane.f32.xlu1 %v2134_v24 }
0x1a10   :  { %v2133_v25 = vpop.xlane.xlu0 %2132 }
0x1a11   :  { %v2137_v26 = vmul.f32 0.03125, %v2133_v25 }
0x1a12   :  { %v2136_v27 = vpop.xlane.xlu1 %2135 }
0x1a13   :  { %v2139_v28 = vadd.f32 1e-12, %v2137_v26  ;;  %v2138_v1 = vmul.f32 0.03125, %v2136_v27 }
0x1a15   :  { %2938 = vrsqrt.f32 %v2139_v28  ;;  %v2140_v3 = vadd.f32 1e-12, %v2138_v1 }
0x1a17   :  { %2940 = vrsqrt.f32 %v2140_v3 }
0x1a1f   :  { %v2939_v31 = vpop.eup %2938 }
0x1a20   :  { %v2143_v36 = vmul.f32 %v2939_v31, %v2127_v50 }
0x1a21   :  { %v2941_v35 = vpop.eup %2940 }
0x1a22   :  { %v2144_v37 = vmul.f32 %v2941_v35, %v2128_v48  ;;  %v2149_v39 = vmul.f32 %v2495_v32, %v2143_v36 }
0x1a24   :  { %v2150_v40 = vmul.f32 %v2495_v32, %v2144_v37  ;;  %v2155_v41 = vadd.f32 %v2496_v38, %v2149_v39 }
0x1a26   :  { %v2156_v42 = vadd.f32 %v2496_v38, %v2150_v40 }
0x1a28   :  { %v2165_v44 = vpack.c.bf16 %v2156_v42, %v2155_v41 }
0x1a2a   :  { %2799 = vmatpush3.bf16.msra.mxu0 %v2165_v44 }
0x1a2b   :  { %2804 = vmatprep.subr.bf16.mxu0 %v2973_v30 }
0x1a2d   :  { %2801 = vmatmul.mubr.msk.bf16.vlgmr.msra.gmra.mrb[48].mxu0 %vm105_vm0, %v2164_v45 }
0x1a2e   :  { %2805 = vmatpush3.bf16.msra.mxu0 %v2878_v46  ;;  %2808 = vmatprep.mubr.msk.bf16.mxu0 %vm2974_vm2, %v2973_v30 }
0x1a2f   :  { %2806 = vmatprep.subr.bf16.mxu0 %v2973_v30  ;;  %v2502_v30 = vld [vmem:[%s3536_s4 + $0x1d] ss:$0 sm:$0xff]  ;;  %s2381_s4 = sshll.u32 %s2975_s2, 4  ;;  %s2382_s4 = int_to_ptr.vmem [resolvable:$true] %s2381_s4 }
0x1a30   :  { %s2948_s8 = scalar_lea.vmem %s2382_s4, 16  ;;  %s2952_s9 = scalar_lea.vmem %s2382_s4, 32 }
0x1a31   :  { %p2949_p0 = scmp.ne.s32.totalorder %s2382_s4, %s2948_s8  ;;  %p2953_p1 = scmp.lt.s32.totalorder %s2382_s4, %s2382_s4 }
0x1a32   :  { %2807 = vmatpush3.bf16.msra.mxu0 %v2879_v52  ;;  %p2954_p2 = scmp.lt.s32.totalorder %s2952_s9, %s2948_s8 }
0x1a34   :  { %p2955_p3 = por %p2954_p2, %p2953_p1 }
0x1a36   :  { %p2956_p4 = pnand %p2955_p3, %p2949_p0 }
0x1b00   :  { %v2203_v54 = vpop.f32.mrb[48].mxu0 }
0x1b01   :  { %v2213_v55 = vpack.c.bf16 %v2203_v54, %v2203_v54  ;;  %v2802_v56 = vpop.f32.mrb[49].mxu0 }
0x1b02   :  { %v2206_v57 = vpop.f32.mrb[50].mxu0 }
0x1b03   :  { %2809 = vmatmul.mubr.msk.bf16.vlgmr.msra.gmra.mrb[52].mxu0 %vm152_vm1, %v2213_v55  ;;  %v2803_v58 = vpop.f32.mrb[51].mxu0 }
0x1bd6   :  { %v2268_v62 = vpop.f32.mrb[52].mxu0 }
0x1bd7   :  { %v2269_v63 = vadd.f32 %v2498_v61, %v2268_v62  ;;  %v2810_v0 = vpop.f32.mrb[53].mxu0 }
0x1bd8   :  { %v2271_v2 = vpop.f32.mrb[54].mxu0 }
0x1bd9   :  { %2942 = vtanh.f32 %v2269_v63  ;;  %v2811_v4 = vpop.f32.mrb[55].mxu0 }
0x1be3   :  { %v2943_v5 = vpop.eup %2942 }
0x1be4   :  { %v2279_v6 = vpack.c.bf16 %v2943_v5, %v2943_v5 }
0x1be6   :  { %2817 = vmatmul.mubr.msk.bf16.vlgmr.msra.gmra.mrb[68].mxu1 %vm152_vm1, %v2279_v6 }
0x1cb9   :  { %v2334_v8 = vpop.f32.mrb[68].mxu1 }
0x1cba   :  { %v2335_v10 = vadd.f32 %v2502_v30, %v2334_v8  ;;  %v2818_v11 = vpop.f32.mrb[69].mxu1 }
0x1cbb   :  { %v2337_v12 = vpop.f32.mrb[70].mxu1 }
0x1cbc   :  { %v2341_v13 = vsel %vm2340_vm5, %v2335_v10, -inf  ;;  %v2819_v14 = vpop.f32.mrb[71].mxu1  ;;  %v2354_v15 = vmul.f32 %v2353_v9, %v2335_v10 }
0x1cbd   :  { %2342 = vmax.xlane.f32.xlu0 %v2341_v13 }
0x1cbe   :  { %v2355_v16 = vsel %vm2340_vm5, %v2354_v15, 0.0 }
0x1cc1   :  { %2356 = vadd.xlane.f32.xlu0 %v2355_v16 }
0x1d4a   :  { %v2343_v17 = vpop.xlane.xlu0 %2342 }
0x1d4b   :  { %v2344_v18 = vsub.f32 %v2335_v10, %v2343_v17 }
0x1d4d   :  { %v2345_v19 = vmul.f32 1.442695, %v2344_v18 }
0x1d4e   :  { %v2357_v48 = vpop.xlane.xlu0 %2356 }
0x1d4f   :  { %2944 = vpow2.f32 %v2345_v19 }
0x1d59   :  { %v2945_v51 = vpop.eup %2944 }
0x1d5a   :  { %v2347_v20 = vsel %vm2340_vm5, %v2945_v51, 0.0 }
0x1d5b   :  { %2348 = vadd.xlane.f32.xlu1 %v2347_v20 }
0x1de8   :  { %v2349_v47 = vpop.xlane.xlu1 %2348 }
0x1de9   :  { %2946 = vlog2.f32 %v2349_v47 }
0x1df3   :  { %v2947_v49 = vpop.eup %2946 }
0x1df4   :  { %v2351_v50 = vmul.f32 0.6931472, %v2947_v49 }
0x1df6   :  { %v2352_v53 = vadd.f32 %v2351_v50, %v2343_v17 }
0x1df8   :  { %v2358_v21 = vsub.f32 %v2352_v53, %v2357_v48 }
0x1dfa   :  { %v2360_v22 = vsel %vm2359_vm6, %v2358_v21, 0.0 }
0x1dfb   :  { %2361 = vadd.xlane.f32.xlu1 %v2360_v22 }
0x1e88   :  { %v2362_v23 = vpop.xlane.xlu1 %2361 }
0x1e89   :  { %v2363_v24 = vrot.slane %v2362_v23, 4 }
0x1e8b   :  { %v2364_v25 = vadd.f32 %v2363_v24, %v2362_v23 }
0x1e8d   :  { %v2365_v26 = vrot.slane %v2364_v25, 2 }
0x1e8f   :  { %v2366_v27 = vadd.f32 %v2365_v26, %v2364_v25 }
0x1e91   :  { %v2367_v28 = vrot.slane %v2366_v27, 1 }
0x1e93   :  { %v2368_v1 = vadd.f32 %v2367_v28, %v2366_v27 }
0x1e95   :  { %2820 = vpush %v2368_v1 }
0x1ec6   :  { %s2821_s7 = spop %2820 }
0x1ec7   :  { %v2370_v3 = vstv %s2821_s7 }
0x1ec8   :  { %v2372_v7 = vmul.f32 0.5, %v2370_v3 }
0x1eca   :  { %2374 = vst.msk [vmem:[#allocation2] sm:$0x1] %vm2373_vm7, %v2372_v7 }
0x1ecb   :  { %2959 = shalt.err (!%p2956_p4)
}
0x1ecc   :  { %s2960_s12 = scalar_lea.hbm %s3537_s5, 16 }
0x1ecd   :  { %p2961_p5 = scmp.ne.s32.totalorder %s3537_s5, %s2960_s12  ;;  %p2964_p6 = scmp.lt.u32.totalorder %s2960_s12, %s3537_s5 }
0x1ecf   :  { %p2966_p7 = pnand %p2964_p6, %p2961_p5 }
0x1ed1   :  { %2969 = shalt.err (!%p2966_p7)
}
0x1ed2   :  { %2384 = dma.vmem_to_hbm [thread:$0]  %s2382_s4, 16, %s3537_s5, [#allocation3]  }
0x1ed3   :  { %2970 = dma.done.wait [#allocation3], 16  }
0x1ed4   :  { %2971 = vsyncadd [#allocation3], 4294967280 }
0x1ed5   :  { %2388 = vsyncpa [#allocation3], 1 }

</bundles_post_ra>
